<compile_context>
chip_gen: v5e
topology: v5e:2x2
jax: 0.10.0
libtpu: 0.0.40
codegen_flags: <defaults>
</compile_context>

<pallas_src>
import functools

import jax
import jax.numpy as jnp
from jax import lax
from jax.experimental import pallas as pl
from jax.experimental.pallas import tpu as pltpu

# Depthwise Conv3d hyper-parameters of the pool module (fixed by the spec).
KT, KH, KW = 3, 3, 3          # kernel (t, h, w)
ST, SH, SW = 1, 2, 2          # stride (t, h, w)
PT, PH, PW = 1, 1, 1          # padding (t, h, w)
LN_EPS = 1e-5                 # nn.LayerNorm default eps


# ------------------------------ small helpers ------------------------------ #

def _pick_bn_tile(bn, per_slab_bytes, budget_bytes=24 * 1024 * 1024, cap=8):
    """Largest divisor of bn that fits the VMEM budget; keep grid >= 2."""
    max_tile = max(1, min(cap, budget_bytes // max(1, per_slab_bytes)))
    divs = [d for d in range(1, bn + 1) if bn % d == 0 and d <= max_tile]
    multi = [d for d in divs if bn // d >= 2]       # megacore wants grid >= 2
    return max(multi) if multi else max(divs)


def _pick_ho_tile(Ho, Wo, C):
    """Ho-tile so the f32 accumulator stays well inside the vreg file."""
    budget = 64 * 1024                              # bytes for the accumulator
    return int(max(1, min(Ho, budget // max(1, Wo * C * 4))))


def _vmem_limit_bytes():
    """~96 MiB on v5e/v6e (128 MiB physical), ~48 MiB on v7x (64 MiB)."""
    cap = 64 * 1024 * 1024
    try:
        cap = int(pltpu.get_tpu_info().vmem_capacity_bytes)
    except Exception:
        pass
    return int(max(32 * 1024 * 1024, min(cap * 3 // 4, 100 * 1024 * 1024)))


# ------------------------------- Pallas kernel ----------------------------- #

def _pool_ln_kernel(x_ref, w_ref, g_ref, b_ref, o_ref, ring_ref, *,
                    T, H, W, C, P, To, Ho, Wo, BN_TILE, HO_TILE):
    """Fused depthwise Conv3d(3,3,3 / s(1,2,2) / p(1,1,1)) + LayerNorm(C),
    including the class/prompt-token LayerNorm and the token concat.

    x_ref   : (BN_TILE, S, C)        input token slabs, S = 1+P+T*H*W
    w_ref   : (27, C)                depthwise taps, idx = (kt*3+kh)*3+kw
    g_ref   : (1, C)                 LayerNorm gamma
    b_ref   : (1, C)                 LayerNorm beta
    o_ref   : (BN_TILE, S_out, C)    S_out = 1+P+To*Ho*Wo (cls|prompt|pooled)
    ring_ref: (KT, H+2, W+2, C)      rolling ring of 3 padded temporal planes
    """
    Hp, Wp = H + 2 * PH, W + 2 * PW
    HEAD = 1 + P                      # class + prompt rows
    HW = H * W
    NTOK = Ho * Wo                    # pooled tokens per temporal slab

    # Loop-invariant parameters, hoisted once per grid step.
    w_all = w_ref[...].astype(jnp.float32)          # (27, C)
    gamma = g_ref[...].astype(jnp.float32)          # (1, C)
    beta = b_ref[...].astype(jnp.float32)           # (1, C)

    def layer_norm(v):                              # v: (rows, C) float32
        mu = jnp.mean(v, axis=-1, keepdims=True)
        xc = v - mu
        var = jnp.mean(xc * xc, axis=-1, keepdims=True)
        return xc * lax.rsqrt(var + LN_EPS) * gamma + beta

    # Zero the 3-plane ring once per grid step.  Interior fills below never
    # touch the halo rows/cols, so the (h,w) halo stays zero for the whole
    # step; only temporal pad planes are re-zeroed (inside fill_plane).
    ring_ref[...] = jnp.zeros_like(ring_ref)
    zero_plane = jnp.zeros((Hp, Wp, C), ring_ref.dtype)

    @pl.loop(0, BN_TILE)
    def _per_slab(bn):
        # ----- class + prompt tokens: LayerNorm, written in place ----------
        head = x_ref[bn, pl.ds(0, HEAD), :].astype(jnp.float32)
        o_ref[bn, pl.ds(0, HEAD), :] = layer_norm(head).astype(o_ref.dtype)

        # ----- rolling ring of padded temporal planes ----------------------
        def fill_plane(tp):
            """Make ring slot tp%KT hold padded-t plane `tp` (traced index)."""
            slot = tp % KT
            is_pad = jnp.logical_or(tp < PT, tp >= T + PT)

            @pl.when(is_pad)
            def _():
                ring_ref[slot] = zero_plane         # temporal "same" padding

            @pl.when(jnp.logical_not(is_pad))
            def _():
                t = jnp.clip(tp - PT, 0, T - 1)     # clamp: branch-safe start
                plane = x_ref[bn, pl.ds(HEAD + t * HW, HW), :]      # (H*W, C)
                # one reshape-store per plane; halo rows/cols left untouched
                ring_ref[slot, pl.ds(PH, H), pl.ds(PW, W), :] = (
                    plane.reshape(H, W, C))

        # Prime the ring (PT == 1, KT == 3): padded-t plane 0 is the leading
        # temporal zero pad; plane 1 is input plane t = 0.
        ring_ref[0] = zero_plane
        p0 = x_ref[bn, pl.ds(HEAD, HW), :]
        ring_ref[1, pl.ds(PH, H), pl.ds(PW, W), :] = p0.reshape(H, W, C)

        # ----- pooled tokens: depthwise conv + fused LayerNorm -------------
        @pl.loop(0, To)
        def _per_to(to):
            fill_plane(to + (KT - 1))               # new plane for this slab
            row0 = HEAD + to * NTOK                 # output row of (to, 0, 0)

            # Accumulator tiled over Ho so it never spills the vreg file.
            for ho0 in range(0, Ho, HO_TILE):
                ht = min(HO_TILE, Ho - ho0)
                acc = jnp.zeros((ht, Wo, C), jnp.float32)
                for kt in range(KT):
                    slot = (to + kt) % KT
                    for kh in range(KH):
                        for kw in range(KW):
                            # TODO(synk): W-parity-split scratch would turn the
                            # stride-2 sublane read below into a dense vld.
                            tap = ring_ref[slot,
                                           pl.ds(SH * ho0 + kh, ht, SH),
                                           pl.ds(kw, Wo, SW), :]
                            wi = (kt * KH + kh) * KW + kw
                            acc = acc + tap.astype(jnp.float32) * w_all[wi, :]
                # Fused LayerNorm epilogue; one (ht*Wo, C) full-sublane store.
                y = layer_norm(acc.reshape(ht * Wo, C))
                o_ref[bn, pl.ds(row0 + ho0 * Wo, ht * Wo), :] = (
                    y.astype(o_ref.dtype))


# -------------------------------- Pool.forward ------------------------------ #

def pool_forward(x, thw, prompt_length, conv_w, ln_gamma, ln_beta, *, bn_tile=None):
    """JAX/Pallas equivalent of Pool.forward.

    x:       (B, N, S, C) or (B, S, C), S = 1 + prompt_length + T*H*W
    conv_w:  (C, KT, KH, KW) depthwise Conv3d weight (PyTorch (C,1,.,.,.) squeezed)
    Returns (out, (To, Ho, Wo)) with out of shape (..., 1+P+To*Ho*Wo, C).
    """
    tensor_dim = x.ndim
    if tensor_dim == 3:                            # _unsqueeze(x, 4, 1)
        x = x[:, None]
    B, N, S, C = x.shape
    T, H, W = thw
    P = int(prompt_length)
    HEAD = 1 + P
    assert S == HEAD + T * H * W, (S, thw, P)

    To = (T + 2 * PT - KT) // ST + 1               # == T for this config
    Ho = (H + 2 * PH - KH) // SH + 1
    Wo = (W + 2 * PW - KW) // SW + 1
    S_out = HEAD + To * Ho * Wo
    BN = B * N

    itemsize = jnp.dtype(x.dtype).itemsize
    per_slab = 2 * (S * C + S_out * C) * itemsize  # double-buffered in + out
    BN_TILE = _pick_bn_tile(BN, per_slab) if bn_tile is None else int(bn_tile)
    assert BN % BN_TILE == 0, (BN, BN_TILE)
    HO_TILE = _pick_ho_tile(Ho, Wo, C)

    x2 = x.reshape(BN, S, C)                                           # free
    w2 = jnp.transpose(conv_w, (1, 2, 3, 0)).reshape(KT * KH * KW, C)  # tiny
    g2 = ln_gamma.reshape(1, C)
    b2 = ln_beta.reshape(1, C)

    kernel = functools.partial(
        _pool_ln_kernel, T=T, H=H, W=W, C=C, P=P, To=To, Ho=Ho, Wo=Wo,
        BN_TILE=BN_TILE, HO_TILE=HO_TILE)

    cost = pl.CostEstimate(
        flops=2 * BN * To * Ho * Wo * C * (KT * KH * KW) + 8 * BN * S_out * C,
        transcendentals=BN * S_out,
        bytes_accessed=(BN * S * C + KT * KH * KW * C + 2 * C
                        + BN * S_out * C) * itemsize)

    out = pl.pallas_call(
        kernel,
        out_shape=jax.ShapeDtypeStruct((BN, S_out, C), x.dtype),
        grid=(BN // BN_TILE,),
        in_specs=[
            pl.BlockSpec((BN_TILE, S, C), lambda i: (i, 0, 0)),
            pl.BlockSpec((KT * KH * KW, C), lambda i: (0, 0)),
            pl.BlockSpec((1, C), lambda i: (0, 0)),
            pl.BlockSpec((1, C), lambda i: (0, 0)),
        ],
        out_specs=pl.BlockSpec((BN_TILE, S_out, C), lambda i: (i, 0, 0)),
        scratch_shapes=[
            # Rolling ring of KT padded (h,w) planes -- independent of T.
            pltpu.VMEM((KT, H + 2 * PH, W + 2 * PW, C), x.dtype),
        ],
        compiler_params=pltpu.CompilerParams(
            dimension_semantics=("parallel",),
            vmem_limit_bytes=_vmem_limit_bytes()),
        cost_estimate=cost,
    )(x2, w2, g2, b2)

    out = out.reshape(B, N, S_out, C)              # free (same memory order)
    if tensor_dim == 3:                            # _squeeze(x, 4, 1, tensor_dim)
        out = out[:, 0]
    return out, (To, Ho, Wo)


# ------------------------- pure-JAX reference (check) ----------------------- #

def pool_forward_ref(x, thw, prompt_length, conv_w, ln_gamma, ln_beta):
    tensor_dim = x.ndim
    if tensor_dim == 3:
        x = x[:, None]
    B, N, S, C = x.shape
    T, H, W = thw
    cls = x[:, :, :1]
    pt = x[:, :, 1:1 + prompt_length]
    xs = x[:, :, 1 + prompt_length:]
    lhs = jnp.transpose(xs, (0, 1, 3, 2)).reshape(B * N, C, T, H, W)
    rhs = conv_w[:, None]                                   # (C, 1, KT, KH, KW)
    y = lax.conv_general_dilated(
        lhs, rhs, (ST, SH, SW), ((PT, PT), (PH, PH), (PW, PW)),
        dimension_numbers=("NCDHW", "OIDHW", "NCDHW"), feature_group_count=C)
    To, Ho, Wo = y.shape[2:]
    y = jnp.transpose(y.reshape(B, N, C, -1), (0, 1, 3, 2))
    out = jnp.concatenate([cls, pt, y], axis=2)
    mu = jnp.mean(out, -1, keepdims=True)
    var = jnp.mean((out - mu) ** 2, -1, keepdims=True)
    out = (out - mu) * lax.rsqrt(var + LN_EPS) * ln_gamma + ln_beta
    if tensor_dim == 3:
        out = out[:, 0]
    return out, (int(To), int(Ho), int(Wo))


# ------------------------------------ main ---------------------------------- #

if __name__ == "__main__":
    key = jax.random.PRNGKey(0)
    k1, k2, k3, k4 = jax.random.split(key, 4)

    B, N, C = 2, 2, 32
    thw = (4, 8, 8)
    prompt_length = 4
    S = 1 + prompt_length + thw[0] * thw[1] * thw[2]          # 261

    x = jax.random.normal(k1, (B, N, S, C), jnp.float32)
    conv_w = jax.random.normal(k2, (C, KT, KH, KW), jnp.float32) * 0.1
    ln_gamma = 1.0 + 0.1 * jax.random.normal(k3, (C,), jnp.float32)
    ln_beta = 0.1 * jax.random.normal(k4, (C,), jnp.float32)

    # 4-D path (B, N, S, C): BN_TILE = 2, grid = (2,)
    out, thw_out = pool_forward(x, thw, prompt_length, conv_w, ln_gamma, ln_beta)
    out = jax.block_until_ready(out)
    ref, thw_ref = pool_forward_ref(x, thw, prompt_length, conv_w,
                                    ln_gamma, ln_beta)
    assert tuple(int(v) for v in thw_out) == thw_ref, (thw_out, thw_ref)
    max_err = float(jnp.max(jnp.abs(out - ref)))
    assert jnp.allclose(out, ref, atol=1e-4, rtol=1e-4), max_err

    # 3-D path (B, S, C): exercises _unsqueeze/_squeeze and BN_TILE = 1.
    x3 = x[:, 0]
    out3, _ = pool_forward(x3, thw, prompt_length, conv_w, ln_gamma, ln_beta)
    out3 = jax.block_until_ready(out3)
    ref3, _ = pool_forward_ref(x3, thw, prompt_length, conv_w,
                               ln_gamma, ln_beta)
    max_err3 = float(jnp.max(jnp.abs(out3 - ref3)))
    assert jnp.allclose(out3, ref3, atol=1e-4, rtol=1e-4), max_err3

    print("KERNEL_OK")
</pallas_src>

<mosaic_0001>
module attributes {stable_mosaic.version = 11 : i64} {
  func.func @_pool_ln_kernel(%arg0: i32, %arg1: memref<2x261x32xf32, #tpu.memory_space<vmem>>, %arg2: memref<27x32xf32, #tpu.memory_space<vmem>>, %arg3: memref<1x32xf32, #tpu.memory_space<vmem>>, %arg4: memref<1x32xf32, #tpu.memory_space<vmem>>, %arg5: memref<2x69x32xf32, #tpu.memory_space<vmem>>, %arg6: memref<3x10x10x32xf32, #tpu.memory_space<vmem>>) attributes {dimension_semantics = [#tpu.dimension_semantics<parallel>], iteration_bounds = array<i64: 2>, scalar_prefetch = 0 : i64, scratch_operands = 1 : i64, tpu.core_type = #tpu.core_type<tc>, window_params = [{transform_indices = @transform_0, window_bounds = array<i64: 2, 261, 32>}, {pipeline_mode = #tpu.pipeline_mode<synchronous>, transform_indices = @transform_1, window_bounds = array<i64: 27, 32>}, {pipeline_mode = #tpu.pipeline_mode<synchronous>, transform_indices = @transform_2, window_bounds = array<i64: 1, 32>}, {pipeline_mode = #tpu.pipeline_mode<synchronous>, transform_indices = @transform_3, window_bounds = array<i64: 1, 32>}, {transform_indices = @transform_4, window_bounds = array<i64: 2, 69, 32>}]} {
    %c0 = arith.constant 0 : index
    %c0_0 = arith.constant 0 : index
    %0 = vector.load %arg2[%c0, %c0_0] : memref<27x32xf32, #tpu.memory_space<vmem>>, vector<27x32xf32>
    %c0_1 = arith.constant 0 : index
    %c0_2 = arith.constant 0 : index
    %1 = vector.load %arg3[%c0_1, %c0_2] : memref<1x32xf32, #tpu.memory_space<vmem>>, vector<1x32xf32>
    %c0_3 = arith.constant 0 : index
    %c0_4 = arith.constant 0 : index
    %2 = vector.load %arg4[%c0_3, %c0_4] : memref<1x32xf32, #tpu.memory_space<vmem>>, vector<1x32xf32>
    %cst = arith.constant 0.000000e+00 : f32
    %3 = vector.broadcast %cst : f32 to vector<3x10x10x32xf32>
    %c0_5 = arith.constant 0 : index
    %c0_6 = arith.constant 0 : index
    %c0_7 = arith.constant 0 : index
    %c0_8 = arith.constant 0 : index
    %4 = vector.load %arg6[%c0_5, %c0_6, %c0_7, %c0_8] : memref<3x10x10x32xf32, #tpu.memory_space<vmem>>, vector<3x10x10x32xf32>
    tpu.vector_store %arg6[%c0_5, %c0_6, %c0_7, %c0_8], %3 {strides = array<i32>} : memref<3x10x10x32xf32, #tpu.memory_space<vmem>>, vector<3x10x10x32xf32>,
    %cst_9 = arith.constant 0.000000e+00 : f32
    %5 = vector.broadcast %cst_9 : f32 to vector<10x10x32xf32>
    %c0_i32 = arith.constant 0 : i32
    %c2_i32 = arith.constant 2 : i32
    %6 = arith.addi %c0_i32, %c2_i32 : i32
    %c1_i32 = arith.constant 1 : i32
    scf.for %arg7 = %c0_i32 to %6 step %c1_i32  : i32 {
      %c1_i32_11 = arith.constant 1 : i32
      %7 = arith.muli %arg7, %c1_i32_11 : i32
      %c0_i32_12 = arith.constant 0 : i32
      %8 = arith.addi %c0_i32_12, %7 : i32
      %9 = arith.index_cast %8 : i32 to index
      %c0_13 = arith.constant 0 : index
      %c0_14 = arith.constant 0 : index
      %10 = vector.load %arg1[%9, %c0_13, %c0_14] : memref<2x261x32xf32, #tpu.memory_space<vmem>>, vector<1x5x32xf32>
      %11 = vector.shape_cast %10 : vector<1x5x32xf32> to vector<5x32xf32>
      %cst_15 = arith.constant dense<0.000000e+00> : vector<5xf32>
      %12 = vector.multi_reduction <add>, %11, %cst_15 [1] : vector<5x32xf32> to vector<5xf32>
      %13 = vector.shape_cast %12 : vector<5xf32> to vector<5x1xf32>
      %cst_16 = arith.constant 3.200000e+01 : f32
      %14 = vector.broadcast %cst_16 : f32 to vector<5x1xf32>
      %15 = arith.divf %13, %14 : vector<5x1xf32>
      %16 = vector.broadcast %15 : vector<5x1xf32> to vector<5x32xf32>
      %17 = arith.subf %11, %16 : vector<5x32xf32>
      %18 = arith.mulf %17, %17 : vector<5x32xf32>
      %cst_17 = arith.constant dense<0.000000e+00> : vector<5xf32>
      %19 = vector.multi_reduction <add>, %18, %cst_17 [1] : vector<5x32xf32> to vector<5xf32>
      %20 = vector.shape_cast %19 : vector<5xf32> to vector<5x1xf32>
      %cst_18 = arith.constant 3.200000e+01 : f32
      %21 = vector.broadcast %cst_18 : f32 to vector<5x1xf32>
      %22 = arith.divf %20, %21 : vector<5x1xf32>
      %cst_19 = arith.constant 9.99999974E-6 : f32
      %23 = vector.broadcast %cst_19 : f32 to vector<5x1xf32>
      %24 = arith.addf %22, %23 : vector<5x1xf32>
      %25 = math.rsqrt %24 : vector<5x1xf32>
      %26 = vector.broadcast %25 : vector<5x1xf32> to vector<5x32xf32>
      %27 = arith.mulf %17, %26 : vector<5x32xf32>
      %28 = vector.broadcast %1 : vector<1x32xf32> to vector<5x32xf32>
      %29 = arith.mulf %27, %28 : vector<5x32xf32>
      %30 = vector.broadcast %2 : vector<1x32xf32> to vector<5x32xf32>
      %31 = arith.addf %29, %30 : vector<5x32xf32>
      %32 = arith.index_cast %8 : i32 to index
      %c0_20 = arith.constant 0 : index
      %c0_21 = arith.constant 0 : index
      %33 = vector.load %arg5[%32, %c0_20, %c0_21] : memref<2x69x32xf32, #tpu.memory_space<vmem>>, vector<1x5x32xf32>
      %34 = vector.shape_cast %33 : vector<1x5x32xf32> to vector<5x32xf32>
      %35 = vector.shape_cast %31 : vector<5x32xf32> to vector<1x5x32xf32>
      tpu.vector_store %arg5[%32, %c0_20, %c0_21], %35 {strides = array<i32>} : memref<2x69x32xf32, #tpu.memory_space<vmem>>, vector<1x5x32xf32>,
      %c0_22 = arith.constant 0 : index
      %c0_23 = arith.constant 0 : index
      %c0_24 = arith.constant 0 : index
      %c0_25 = arith.constant 0 : index
      %36 = vector.load %arg6[%c0_22, %c0_23, %c0_24, %c0_25] : memref<3x10x10x32xf32, #tpu.memory_space<vmem>>, vector<1x10x10x32xf32>
      %37 = vector.shape_cast %36 : vector<1x10x10x32xf32> to vector<10x10x32xf32>
      %38 = vector.shape_cast %5 : vector<10x10x32xf32> to vector<1x10x10x32xf32>
      tpu.vector_store %arg6[%c0_22, %c0_23, %c0_24, %c0_25], %38 {strides = array<i32>} : memref<3x10x10x32xf32, #tpu.memory_space<vmem>>, vector<1x10x10x32xf32>,
      %39 = arith.index_cast %8 : i32 to index
      %c5 = arith.constant 5 : index
      %c0_26 = arith.constant 0 : index
      %40 = vector.load %arg1[%39, %c5, %c0_26] : memref<2x261x32xf32, #tpu.memory_space<vmem>>, vector<1x64x32xf32>
      %41 = vector.shape_cast %40 : vector<1x64x32xf32> to vector<64x32xf32>
      %42 = vector.shape_cast %41 : vector<64x32xf32> to vector<8x8x32xf32>
      %c1 = arith.constant 1 : index
      %c1_27 = arith.constant 1 : index
      %c1_28 = arith.constant 1 : index
      %c0_29 = arith.constant 0 : index
      %43 = vector.load %arg6[%c1, %c1_27, %c1_28, %c0_29] : memref<3x10x10x32xf32, #tpu.memory_space<vmem>>, vector<1x8x8x32xf32>
      %44 = vector.shape_cast %43 : vector<1x8x8x32xf32> to vector<8x8x32xf32>
      %45 = vector.shape_cast %42 : vector<8x8x32xf32> to vector<1x8x8x32xf32>
      tpu.vector_store %arg6[%c1, %c1_27, %c1_28, %c0_29], %45 {strides = array<i32>} : memref<3x10x10x32xf32, #tpu.memory_space<vmem>>, vector<1x8x8x32xf32>,
      %c0_i32_30 = arith.constant 0 : i32
      %c4_i32 = arith.constant 4 : i32
      %46 = arith.addi %c0_i32_30, %c4_i32 : i32
      %c1_i32_31 = arith.constant 1 : i32
      scf.for %arg8 = %c0_i32_30 to %46 step %c1_i32_31  : i32 {
        %c1_i32_33 = arith.constant 1 : i32
        %47 = arith.muli %arg8, %c1_i32_33 : i32
        %c0_i32_34 = arith.constant 0 : i32
        %48 = arith.addi %c0_i32_34, %47 : i32
        %c2_i32_35 = arith.constant 2 : i32
        %49 = arith.addi %48, %c2_i32_35 : i32
        %c3_i32 = arith.constant 3 : i32
        %c0_i32_36 = arith.constant 0 : i32
        %50 = arith.cmpi eq, %c3_i32, %c0_i32_36 : i32
        %c1_i32_37 = arith.constant 1 : i32
        %51 = arith.select %50, %c1_i32_37, %c3_i32 : i32
        %52 = arith.remsi %49, %51 : i32
        %c0_i32_38 = arith.constant 0 : i32
        %53 = arith.cmpi ne, %52, %c0_i32_38 : i32
        %c0_i32_39 = arith.constant 0 : i32
        %54 = arith.cmpi slt, %52, %c0_i32_39 : i32
        %c0_i32_40 = arith.constant 0 : i32
        %55 = arith.cmpi slt, %51, %c0_i32_40 : i32
        %56 = arith.xori %54, %55 : i1
        %57 = arith.andi %56, %53 : i1
        %58 = arith.addi %52, %51 : i32
        %59 = arith.select %57, %58, %52 : i32
        %c1_i32_41 = arith.constant 1 : i32
        %60 = arith.cmpi slt, %49, %c1_i32_41 : i32
        %c5_i32 = arith.constant 5 : i32
        %61 = arith.cmpi sge, %49, %c5_i32 : i32
        %62 = arith.ori %60, %61 : i1
        %63 = arith.extui %62 : i1 to i32
        %c0_i32_42 = arith.constant 0 : i32
        %64 = arith.cmpi ne, %63, %c0_i32_42 : i32
        scf.if %64 {
          %374 = arith.index_cast %59 : i32 to index
          %c0_154 = arith.constant 0 : index
          %c0_155 = arith.constant 0 : index
          %c0_156 = arith.constant 0 : index
          %375 = vector.load %arg6[%374, %c0_154, %c0_155, %c0_156] : memref<3x10x10x32xf32, #tpu.memory_space<vmem>>, vector<1x10x10x32xf32>
          %376 = vector.shape_cast %375 : vector<1x10x10x32xf32> to vector<10x10x32xf32>
          %377 = vector.shape_cast %5 : vector<10x10x32xf32> to vector<1x10x10x32xf32>
          tpu.vector_store %arg6[%374, %c0_154, %c0_155, %c0_156], %377 {strides = array<i32>} : memref<3x10x10x32xf32, #tpu.memory_space<vmem>>, vector<1x10x10x32xf32>,
        } else {
        }
        %true = arith.constant true
        %65 = arith.xori %62, %true : i1
        %66 = arith.extui %65 : i1 to i32
        %c0_i32_43 = arith.constant 0 : i32
        %67 = arith.cmpi ne, %66, %c0_i32_43 : i32
        scf.if %67 {
          %c1_i32_154 = arith.constant 1 : i32
          %374 = arith.subi %49, %c1_i32_154 : i32
          %c0_i32_155 = arith.constant 0 : i32
          %c3_i32_156 = arith.constant 3 : i32
          %375 = arith.maxsi %c0_i32_155, %374 : i32
          %376 = arith.minsi %c3_i32_156, %375 : i32
          %c64_i32 = arith.constant 64 : i32
          %377 = arith.muli %376, %c64_i32 : i32
          %c5_i32_157 = arith.constant 5 : i32
          %378 = arith.addi %c5_i32_157, %377 : i32
          %379 = arith.index_cast %8 : i32 to index
          %380 = arith.index_cast %378 : i32 to index
          %c0_158 = arith.constant 0 : index
          %381 = vector.load %arg1[%379, %380, %c0_158] : memref<2x261x32xf32, #tpu.memory_space<vmem>>, vector<1x64x32xf32>
          %382 = vector.shape_cast %381 : vector<1x64x32xf32> to vector<64x32xf32>
          %383 = vector.shape_cast %382 : vector<64x32xf32> to vector<8x8x32xf32>
          %384 = arith.index_cast %59 : i32 to index
          %c1_159 = arith.constant 1 : index
          %c1_160 = arith.constant 1 : index
          %c0_161 = arith.constant 0 : index
          %385 = vector.load %arg6[%384, %c1_159, %c1_160, %c0_161] : memref<3x10x10x32xf32, #tpu.memory_space<vmem>>, vector<1x8x8x32xf32>
          %386 = vector.shape_cast %385 : vector<1x8x8x32xf32> to vector<8x8x32xf32>
          %387 = vector.shape_cast %383 : vector<8x8x32xf32> to vector<1x8x8x32xf32>
          tpu.vector_store %arg6[%384, %c1_159, %c1_160, %c0_161], %387 {strides = array<i32>} : memref<3x10x10x32xf32, #tpu.memory_space<vmem>>, vector<1x8x8x32xf32>,
        } else {
        }
        %c16_i32 = arith.constant 16 : i32
        %68 = arith.muli %48, %c16_i32 : i32
        %c5_i32_44 = arith.constant 5 : i32
        %69 = arith.addi %c5_i32_44, %68 : i32
        %cst_45 = arith.constant 0.000000e+00 : f32
        %70 = vector.broadcast %cst_45 : f32 to vector<4x4x32xf32>
        %c0_i32_46 = arith.constant 0 : i32
        %71 = arith.addi %48, %c0_i32_46 : i32
        %c3_i32_47 = arith.constant 3 : i32
        %c0_i32_48 = arith.constant 0 : i32
        %72 = arith.cmpi eq, %c3_i32_47, %c0_i32_48 : i32
        %c1_i32_49 = arith.constant 1 : i32
        %73 = arith.select %72, %c1_i32_49, %c3_i32_47 : i32
        %74 = arith.remsi %71, %73 : i32
        %c0_i32_50 = arith.constant 0 : i32
        %75 = arith.cmpi ne, %74, %c0_i32_50 : i32
        %c0_i32_51 = arith.constant 0 : i32
        %76 = arith.cmpi slt, %74, %c0_i32_51 : i32
        %c0_i32_52 = arith.constant 0 : i32
        %77 = arith.cmpi slt, %73, %c0_i32_52 : i32
        %78 = arith.xori %76, %77 : i1
        %79 = arith.andi %78, %75 : i1
        %80 = arith.addi %74, %73 : i32
        %81 = arith.select %79, %80, %74 : i32
        %82 = arith.index_cast %81 : i32 to index
        %c0_53 = arith.constant 0 : index
        %c0_54 = arith.constant 0 : index
        %c0_55 = arith.constant 0 : index
        %83 = tpu.strided_load %arg6[%82, %c0_53, %c0_54, %c0_55] {strides = array<i32: 1, 2, 2, 1>} : memref<3x10x10x32xf32, #tpu.memory_space<vmem>>, vector<1x4x4x32xf32>
        %84 = vector.shape_cast %83 : vector<1x4x4x32xf32> to vector<4x4x32xf32>
        %85 = vector.extract_strided_slice %0 {offsets = [0, 0], sizes = [1, 32], strides = [1, 1]} : vector<27x32xf32> to vector<1x32xf32>
        %86 = vector.shape_cast %85 : vector<1x32xf32> to vector<32xf32>
        %87 = vector.shape_cast %86 : vector<32xf32> to vector<1x1x32xf32>
        %88 = vector.broadcast %87 : vector<1x1x32xf32> to vector<4x4x32xf32>
        %89 = arith.mulf %84, %88 : vector<4x4x32xf32>
        %90 = arith.addf %70, %89 : vector<4x4x32xf32>
        %91 = arith.index_cast %81 : i32 to index
        %c0_56 = arith.constant 0 : index
        %c1_57 = arith.constant 1 : index
        %c0_58 = arith.constant 0 : index
        %92 = tpu.strided_load %arg6[%91, %c0_56, %c1_57, %c0_58] {strides = array<i32: 1, 2, 2, 1>} : memref<3x10x10x32xf32, #tpu.memory_space<vmem>>, vector<1x4x4x32xf32>
        %93 = vector.shape_cast %92 : vector<1x4x4x32xf32> to vector<4x4x32xf32>
        %94 = vector.extract_strided_slice %0 {offsets = [1, 0], sizes = [1, 32], strides = [1, 1]} : vector<27x32xf32> to vector<1x32xf32>
        %95 = vector.shape_cast %94 : vector<1x32xf32> to vector<32xf32>
        %96 = vector.shape_cast %95 : vector<32xf32> to vector<1x1x32xf32>
        %97 = vector.broadcast %96 : vector<1x1x32xf32> to vector<4x4x32xf32>
        %98 = arith.mulf %93, %97 : vector<4x4x32xf32>
        %99 = arith.addf %90, %98 : vector<4x4x32xf32>
        %100 = arith.index_cast %81 : i32 to index
        %c0_59 = arith.constant 0 : index
        %c2 = arith.constant 2 : index
        %c0_60 = arith.constant 0 : index
        %101 = tpu.strided_load %arg6[%100, %c0_59, %c2, %c0_60] {strides = array<i32: 1, 2, 2, 1>} : memref<3x10x10x32xf32, #tpu.memory_space<vmem>>, vector<1x4x4x32xf32>
        %102 = vector.shape_cast %101 : vector<1x4x4x32xf32> to vector<4x4x32xf32>
        %103 = vector.extract_strided_slice %0 {offsets = [2, 0], sizes = [1, 32], strides = [1, 1]} : vector<27x32xf32> to vector<1x32xf32>
        %104 = vector.shape_cast %103 : vector<1x32xf32> to vector<32xf32>
        %105 = vector.shape_cast %104 : vector<32xf32> to vector<1x1x32xf32>
        %106 = vector.broadcast %105 : vector<1x1x32xf32> to vector<4x4x32xf32>
        %107 = arith.mulf %102, %106 : vector<4x4x32xf32>
        %108 = arith.addf %99, %107 : vector<4x4x32xf32>
        %109 = arith.index_cast %81 : i32 to index
        %c1_61 = arith.constant 1 : index
        %c0_62 = arith.constant 0 : index
        %c0_63 = arith.constant 0 : index
        %110 = tpu.strided_load %arg6[%109, %c1_61, %c0_62, %c0_63] {strides = array<i32: 1, 2, 2, 1>} : memref<3x10x10x32xf32, #tpu.memory_space<vmem>>, vector<1x4x4x32xf32>
        %111 = vector.shape_cast %110 : vector<1x4x4x32xf32> to vector<4x4x32xf32>
        %112 = vector.extract_strided_slice %0 {offsets = [3, 0], sizes = [1, 32], strides = [1, 1]} : vector<27x32xf32> to vector<1x32xf32>
        %113 = vector.shape_cast %112 : vector<1x32xf32> to vector<32xf32>
        %114 = vector.shape_cast %113 : vector<32xf32> to vector<1x1x32xf32>
        %115 = vector.broadcast %114 : vector<1x1x32xf32> to vector<4x4x32xf32>
        %116 = arith.mulf %111, %115 : vector<4x4x32xf32>
        %117 = arith.addf %108, %116 : vector<4x4x32xf32>
        %118 = arith.index_cast %81 : i32 to index
        %c1_64 = arith.constant 1 : index
        %c1_65 = arith.constant 1 : index
        %c0_66 = arith.constant 0 : index
        %119 = tpu.strided_load %arg6[%118, %c1_64, %c1_65, %c0_66] {strides = array<i32: 1, 2, 2, 1>} : memref<3x10x10x32xf32, #tpu.memory_space<vmem>>, vector<1x4x4x32xf32>
        %120 = vector.shape_cast %119 : vector<1x4x4x32xf32> to vector<4x4x32xf32>
        %121 = vector.extract_strided_slice %0 {offsets = [4, 0], sizes = [1, 32], strides = [1, 1]} : vector<27x32xf32> to vector<1x32xf32>
        %122 = vector.shape_cast %121 : vector<1x32xf32> to vector<32xf32>
        %123 = vector.shape_cast %122 : vector<32xf32> to vector<1x1x32xf32>
        %124 = vector.broadcast %123 : vector<1x1x32xf32> to vector<4x4x32xf32>
        %125 = arith.mulf %120, %124 : vector<4x4x32xf32>
        %126 = arith.addf %117, %125 : vector<4x4x32xf32>
        %127 = arith.index_cast %81 : i32 to index
        %c1_67 = arith.constant 1 : index
        %c2_68 = arith.constant 2 : index
        %c0_69 = arith.constant 0 : index
        %128 = tpu.strided_load %arg6[%127, %c1_67, %c2_68, %c0_69] {strides = array<i32: 1, 2, 2, 1>} : memref<3x10x10x32xf32, #tpu.memory_space<vmem>>, vector<1x4x4x32xf32>
        %129 = vector.shape_cast %128 : vector<1x4x4x32xf32> to vector<4x4x32xf32>
        %130 = vector.extract_strided_slice %0 {offsets = [5, 0], sizes = [1, 32], strides = [1, 1]} : vector<27x32xf32> to vector<1x32xf32>
        %131 = vector.shape_cast %130 : vector<1x32xf32> to vector<32xf32>
        %132 = vector.shape_cast %131 : vector<32xf32> to vector<1x1x32xf32>
        %133 = vector.broadcast %132 : vector<1x1x32xf32> to vector<4x4x32xf32>
        %134 = arith.mulf %129, %133 : vector<4x4x32xf32>
        %135 = arith.addf %126, %134 : vector<4x4x32xf32>
        %136 = arith.index_cast %81 : i32 to index
        %c2_70 = arith.constant 2 : index
        %c0_71 = arith.constant 0 : index
        %c0_72 = arith.constant 0 : index
        %137 = tpu.strided_load %arg6[%136, %c2_70, %c0_71, %c0_72] {strides = array<i32: 1, 2, 2, 1>} : memref<3x10x10x32xf32, #tpu.memory_space<vmem>>, vector<1x4x4x32xf32>
        %138 = vector.shape_cast %137 : vector<1x4x4x32xf32> to vector<4x4x32xf32>
        %139 = vector.extract_strided_slice %0 {offsets = [6, 0], sizes = [1, 32], strides = [1, 1]} : vector<27x32xf32> to vector<1x32xf32>
        %140 = vector.shape_cast %139 : vector<1x32xf32> to vector<32xf32>
        %141 = vector.shape_cast %140 : vector<32xf32> to vector<1x1x32xf32>
        %142 = vector.broadcast %141 : vector<1x1x32xf32> to vector<4x4x32xf32>
        %143 = arith.mulf %138, %142 : vector<4x4x32xf32>
        %144 = arith.addf %135, %143 : vector<4x4x32xf32>
        %145 = arith.index_cast %81 : i32 to index
        %c2_73 = arith.constant 2 : index
        %c1_74 = arith.constant 1 : index
        %c0_75 = arith.constant 0 : index
        %146 = tpu.strided_load %arg6[%145, %c2_73, %c1_74, %c0_75] {strides = array<i32: 1, 2, 2, 1>} : memref<3x10x10x32xf32, #tpu.memory_space<vmem>>, vector<1x4x4x32xf32>
        %147 = vector.shape_cast %146 : vector<1x4x4x32xf32> to vector<4x4x32xf32>
        %148 = vector.extract_strided_slice %0 {offsets = [7, 0], sizes = [1, 32], strides = [1, 1]} : vector<27x32xf32> to vector<1x32xf32>
        %149 = vector.shape_cast %148 : vector<1x32xf32> to vector<32xf32>
        %150 = vector.shape_cast %149 : vector<32xf32> to vector<1x1x32xf32>
        %151 = vector.broadcast %150 : vector<1x1x32xf32> to vector<4x4x32xf32>
        %152 = arith.mulf %147, %151 : vector<4x4x32xf32>
        %153 = arith.addf %144, %152 : vector<4x4x32xf32>
        %154 = arith.index_cast %81 : i32 to index
        %c2_76 = arith.constant 2 : index
        %c2_77 = arith.constant 2 : index
        %c0_78 = arith.constant 0 : index
        %155 = tpu.strided_load %arg6[%154, %c2_76, %c2_77, %c0_78] {strides = array<i32: 1, 2, 2, 1>} : memref<3x10x10x32xf32, #tpu.memory_space<vmem>>, vector<1x4x4x32xf32>
        %156 = vector.shape_cast %155 : vector<1x4x4x32xf32> to vector<4x4x32xf32>
        %157 = vector.extract_strided_slice %0 {offsets = [8, 0], sizes = [1, 32], strides = [1, 1]} : vector<27x32xf32> to vector<1x32xf32>
        %158 = vector.shape_cast %157 : vector<1x32xf32> to vector<32xf32>
        %159 = vector.shape_cast %158 : vector<32xf32> to vector<1x1x32xf32>
        %160 = vector.broadcast %159 : vector<1x1x32xf32> to vector<4x4x32xf32>
        %161 = arith.mulf %156, %160 : vector<4x4x32xf32>
        %162 = arith.addf %153, %161 : vector<4x4x32xf32>
        %c1_i32_79 = arith.constant 1 : i32
        %163 = arith.addi %48, %c1_i32_79 : i32
        %c3_i32_80 = arith.constant 3 : i32
        %c0_i32_81 = arith.constant 0 : i32
        %164 = arith.cmpi eq, %c3_i32_80, %c0_i32_81 : i32
        %c1_i32_82 = arith.constant 1 : i32
        %165 = arith.select %164, %c1_i32_82, %c3_i32_80 : i32
        %166 = arith.remsi %163, %165 : i32
        %c0_i32_83 = arith.constant 0 : i32
        %167 = arith.cmpi ne, %166, %c0_i32_83 : i32
        %c0_i32_84 = arith.constant 0 : i32
        %168 = arith.cmpi slt, %166, %c0_i32_84 : i32
        %c0_i32_85 = arith.constant 0 : i32
        %169 = arith.cmpi slt, %165, %c0_i32_85 : i32
        %170 = arith.xori %168, %169 : i1
        %171 = arith.andi %170, %167 : i1
        %172 = arith.addi %166, %165 : i32
        %173 = arith.select %171, %172, %166 : i32
        %174 = arith.index_cast %173 : i32 to index
        %c0_86 = arith.constant 0 : index
        %c0_87 = arith.constant 0 : index
        %c0_88 = arith.constant 0 : index
        %175 = tpu.strided_load %arg6[%174, %c0_86, %c0_87, %c0_88] {strides = array<i32: 1, 2, 2, 1>} : memref<3x10x10x32xf32, #tpu.memory_space<vmem>>, vector<1x4x4x32xf32>
        %176 = vector.shape_cast %175 : vector<1x4x4x32xf32> to vector<4x4x32xf32>
        %177 = vector.extract_strided_slice %0 {offsets = [9, 0], sizes = [1, 32], strides = [1, 1]} : vector<27x32xf32> to vector<1x32xf32>
        %178 = vector.shape_cast %177 : vector<1x32xf32> to vector<32xf32>
        %179 = vector.shape_cast %178 : vector<32xf32> to vector<1x1x32xf32>
        %180 = vector.broadcast %179 : vector<1x1x32xf32> to vector<4x4x32xf32>
        %181 = arith.mulf %176, %180 : vector<4x4x32xf32>
        %182 = arith.addf %162, %181 : vector<4x4x32xf32>
        %183 = arith.index_cast %173 : i32 to index
        %c0_89 = arith.constant 0 : index
        %c1_90 = arith.constant 1 : index
        %c0_91 = arith.constant 0 : index
        %184 = tpu.strided_load %arg6[%183, %c0_89, %c1_90, %c0_91] {strides = array<i32: 1, 2, 2, 1>} : memref<3x10x10x32xf32, #tpu.memory_space<vmem>>, vector<1x4x4x32xf32>
        %185 = vector.shape_cast %184 : vector<1x4x4x32xf32> to vector<4x4x32xf32>
        %186 = vector.extract_strided_slice %0 {offsets = [10, 0], sizes = [1, 32], strides = [1, 1]} : vector<27x32xf32> to vector<1x32xf32>
        %187 = vector.shape_cast %186 : vector<1x32xf32> to vector<32xf32>
        %188 = vector.shape_cast %187 : vector<32xf32> to vector<1x1x32xf32>
        %189 = vector.broadcast %188 : vector<1x1x32xf32> to vector<4x4x32xf32>
        %190 = arith.mulf %185, %189 : vector<4x4x32xf32>
        %191 = arith.addf %182, %190 : vector<4x4x32xf32>
        %192 = arith.index_cast %173 : i32 to index
        %c0_92 = arith.constant 0 : index
        %c2_93 = arith.constant 2 : index
        %c0_94 = arith.constant 0 : index
        %193 = tpu.strided_load %arg6[%192, %c0_92, %c2_93, %c0_94] {strides = array<i32: 1, 2, 2, 1>} : memref<3x10x10x32xf32, #tpu.memory_space<vmem>>, vector<1x4x4x32xf32>
        %194 = vector.shape_cast %193 : vector<1x4x4x32xf32> to vector<4x4x32xf32>
        %195 = vector.extract_strided_slice %0 {offsets = [11, 0], sizes = [1, 32], strides = [1, 1]} : vector<27x32xf32> to vector<1x32xf32>
        %196 = vector.shape_cast %195 : vector<1x32xf32> to vector<32xf32>
        %197 = vector.shape_cast %196 : vector<32xf32> to vector<1x1x32xf32>
        %198 = vector.broadcast %197 : vector<1x1x32xf32> to vector<4x4x32xf32>
        %199 = arith.mulf %194, %198 : vector<4x4x32xf32>
        %200 = arith.addf %191, %199 : vector<4x4x32xf32>
        %201 = arith.index_cast %173 : i32 to index
        %c1_95 = arith.constant 1 : index
        %c0_96 = arith.constant 0 : index
        %c0_97 = arith.constant 0 : index
        %202 = tpu.strided_load %arg6[%201, %c1_95, %c0_96, %c0_97] {strides = array<i32: 1, 2, 2, 1>} : memref<3x10x10x32xf32, #tpu.memory_space<vmem>>, vector<1x4x4x32xf32>
        %203 = vector.shape_cast %202 : vector<1x4x4x32xf32> to vector<4x4x32xf32>
        %204 = vector.extract_strided_slice %0 {offsets = [12, 0], sizes = [1, 32], strides = [1, 1]} : vector<27x32xf32> to vector<1x32xf32>
        %205 = vector.shape_cast %204 : vector<1x32xf32> to vector<32xf32>
        %206 = vector.shape_cast %205 : vector<32xf32> to vector<1x1x32xf32>
        %207 = vector.broadcast %206 : vector<1x1x32xf32> to vector<4x4x32xf32>
        %208 = arith.mulf %203, %207 : vector<4x4x32xf32>
        %209 = arith.addf %200, %208 : vector<4x4x32xf32>
        %210 = arith.index_cast %173 : i32 to index
        %c1_98 = arith.constant 1 : index
        %c1_99 = arith.constant 1 : index
        %c0_100 = arith.constant 0 : index
        %211 = tpu.strided_load %arg6[%210, %c1_98, %c1_99, %c0_100] {strides = array<i32: 1, 2, 2, 1>} : memref<3x10x10x32xf32, #tpu.memory_space<vmem>>, vector<1x4x4x32xf32>
        %212 = vector.shape_cast %211 : vector<1x4x4x32xf32> to vector<4x4x32xf32>
        %213 = vector.extract_strided_slice %0 {offsets = [13, 0], sizes = [1, 32], strides = [1, 1]} : vector<27x32xf32> to vector<1x32xf32>
        %214 = vector.shape_cast %213 : vector<1x32xf32> to vector<32xf32>
        %215 = vector.shape_cast %214 : vector<32xf32> to vector<1x1x32xf32>
        %216 = vector.broadcast %215 : vector<1x1x32xf32> to vector<4x4x32xf32>
        %217 = arith.mulf %212, %216 : vector<4x4x32xf32>
        %218 = arith.addf %209, %217 : vector<4x4x32xf32>
        %219 = arith.index_cast %173 : i32 to index
        %c1_101 = arith.constant 1 : index
        %c2_102 = arith.constant 2 : index
        %c0_103 = arith.constant 0 : index
        %220 = tpu.strided_load %arg6[%219, %c1_101, %c2_102, %c0_103] {strides = array<i32: 1, 2, 2, 1>} : memref<3x10x10x32xf32, #tpu.memory_space<vmem>>, vector<1x4x4x32xf32>
        %221 = vector.shape_cast %220 : vector<1x4x4x32xf32> to vector<4x4x32xf32>
        %222 = vector.extract_strided_slice %0 {offsets = [14, 0], sizes = [1, 32], strides = [1, 1]} : vector<27x32xf32> to vector<1x32xf32>
        %223 = vector.shape_cast %222 : vector<1x32xf32> to vector<32xf32>
        %224 = vector.shape_cast %223 : vector<32xf32> to vector<1x1x32xf32>
        %225 = vector.broadcast %224 : vector<1x1x32xf32> to vector<4x4x32xf32>
        %226 = arith.mulf %221, %225 : vector<4x4x32xf32>
        %227 = arith.addf %218, %226 : vector<4x4x32xf32>
        %228 = arith.index_cast %173 : i32 to index
        %c2_104 = arith.constant 2 : index
        %c0_105 = arith.constant 0 : index
        %c0_106 = arith.constant 0 : index
        %229 = tpu.strided_load %arg6[%228, %c2_104, %c0_105, %c0_106] {strides = array<i32: 1, 2, 2, 1>} : memref<3x10x10x32xf32, #tpu.memory_space<vmem>>, vector<1x4x4x32xf32>
        %230 = vector.shape_cast %229 : vector<1x4x4x32xf32> to vector<4x4x32xf32>
        %231 = vector.extract_strided_slice %0 {offsets = [15, 0], sizes = [1, 32], strides = [1, 1]} : vector<27x32xf32> to vector<1x32xf32>
        %232 = vector.shape_cast %231 : vector<1x32xf32> to vector<32xf32>
        %233 = vector.shape_cast %232 : vector<32xf32> to vector<1x1x32xf32>
        %234 = vector.broadcast %233 : vector<1x1x32xf32> to vector<4x4x32xf32>
        %235 = arith.mulf %230, %234 : vector<4x4x32xf32>
        %236 = arith.addf %227, %235 : vector<4x4x32xf32>
        %237 = arith.index_cast %173 : i32 to index
        %c2_107 = arith.constant 2 : index
        %c1_108 = arith.constant 1 : index
        %c0_109 = arith.constant 0 : index
        %238 = tpu.strided_load %arg6[%237, %c2_107, %c1_108, %c0_109] {strides = array<i32: 1, 2, 2, 1>} : memref<3x10x10x32xf32, #tpu.memory_space<vmem>>, vector<1x4x4x32xf32>
        %239 = vector.shape_cast %238 : vector<1x4x4x32xf32> to vector<4x4x32xf32>
        %240 = vector.extract_strided_slice %0 {offsets = [16, 0], sizes = [1, 32], strides = [1, 1]} : vector<27x32xf32> to vector<1x32xf32>
        %241 = vector.shape_cast %240 : vector<1x32xf32> to vector<32xf32>
        %242 = vector.shape_cast %241 : vector<32xf32> to vector<1x1x32xf32>
        %243 = vector.broadcast %242 : vector<1x1x32xf32> to vector<4x4x32xf32>
        %244 = arith.mulf %239, %243 : vector<4x4x32xf32>
        %245 = arith.addf %236, %244 : vector<4x4x32xf32>
        %246 = arith.index_cast %173 : i32 to index
        %c2_110 = arith.constant 2 : index
        %c2_111 = arith.constant 2 : index
        %c0_112 = arith.constant 0 : index
        %247 = tpu.strided_load %arg6[%246, %c2_110, %c2_111, %c0_112] {strides = array<i32: 1, 2, 2, 1>} : memref<3x10x10x32xf32, #tpu.memory_space<vmem>>, vector<1x4x4x32xf32>
        %248 = vector.shape_cast %247 : vector<1x4x4x32xf32> to vector<4x4x32xf32>
        %249 = vector.extract_strided_slice %0 {offsets = [17, 0], sizes = [1, 32], strides = [1, 1]} : vector<27x32xf32> to vector<1x32xf32>
        %250 = vector.shape_cast %249 : vector<1x32xf32> to vector<32xf32>
        %251 = vector.shape_cast %250 : vector<32xf32> to vector<1x1x32xf32>
        %252 = vector.broadcast %251 : vector<1x1x32xf32> to vector<4x4x32xf32>
        %253 = arith.mulf %248, %252 : vector<4x4x32xf32>
        %254 = arith.addf %245, %253 : vector<4x4x32xf32>
        %c2_i32_113 = arith.constant 2 : i32
        %255 = arith.addi %48, %c2_i32_113 : i32
        %c3_i32_114 = arith.constant 3 : i32
        %c0_i32_115 = arith.constant 0 : i32
        %256 = arith.cmpi eq, %c3_i32_114, %c0_i32_115 : i32
        %c1_i32_116 = arith.constant 1 : i32
        %257 = arith.select %256, %c1_i32_116, %c3_i32_114 : i32
        %258 = arith.remsi %255, %257 : i32
        %c0_i32_117 = arith.constant 0 : i32
        %259 = arith.cmpi ne, %258, %c0_i32_117 : i32
        %c0_i32_118 = arith.constant 0 : i32
        %260 = arith.cmpi slt, %258, %c0_i32_118 : i32
        %c0_i32_119 = arith.constant 0 : i32
        %261 = arith.cmpi slt, %257, %c0_i32_119 : i32
        %262 = arith.xori %260, %261 : i1
        %263 = arith.andi %262, %259 : i1
        %264 = arith.addi %258, %257 : i32
        %265 = arith.select %263, %264, %258 : i32
        %266 = arith.index_cast %265 : i32 to index
        %c0_120 = arith.constant 0 : index
        %c0_121 = arith.constant 0 : index
        %c0_122 = arith.constant 0 : index
        %267 = tpu.strided_load %arg6[%266, %c0_120, %c0_121, %c0_122] {strides = array<i32: 1, 2, 2, 1>} : memref<3x10x10x32xf32, #tpu.memory_space<vmem>>, vector<1x4x4x32xf32>
        %268 = vector.shape_cast %267 : vector<1x4x4x32xf32> to vector<4x4x32xf32>
        %269 = vector.extract_strided_slice %0 {offsets = [18, 0], sizes = [1, 32], strides = [1, 1]} : vector<27x32xf32> to vector<1x32xf32>
        %270 = vector.shape_cast %269 : vector<1x32xf32> to vector<32xf32>
        %271 = vector.shape_cast %270 : vector<32xf32> to vector<1x1x32xf32>
        %272 = vector.broadcast %271 : vector<1x1x32xf32> to vector<4x4x32xf32>
        %273 = arith.mulf %268, %272 : vector<4x4x32xf32>
        %274 = arith.addf %254, %273 : vector<4x4x32xf32>
        %275 = arith.index_cast %265 : i32 to index
        %c0_123 = arith.constant 0 : index
        %c1_124 = arith.constant 1 : index
        %c0_125 = arith.constant 0 : index
        %276 = tpu.strided_load %arg6[%275, %c0_123, %c1_124, %c0_125] {strides = array<i32: 1, 2, 2, 1>} : memref<3x10x10x32xf32, #tpu.memory_space<vmem>>, vector<1x4x4x32xf32>
        %277 = vector.shape_cast %276 : vector<1x4x4x32xf32> to vector<4x4x32xf32>
        %278 = vector.extract_strided_slice %0 {offsets = [19, 0], sizes = [1, 32], strides = [1, 1]} : vector<27x32xf32> to vector<1x32xf32>
        %279 = vector.shape_cast %278 : vector<1x32xf32> to vector<32xf32>
        %280 = vector.shape_cast %279 : vector<32xf32> to vector<1x1x32xf32>
        %281 = vector.broadcast %280 : vector<1x1x32xf32> to vector<4x4x32xf32>
        %282 = arith.mulf %277, %281 : vector<4x4x32xf32>
        %283 = arith.addf %274, %282 : vector<4x4x32xf32>
        %284 = arith.index_cast %265 : i32 to index
        %c0_126 = arith.constant 0 : index
        %c2_127 = arith.constant 2 : index
        %c0_128 = arith.constant 0 : index
        %285 = tpu.strided_load %arg6[%284, %c0_126, %c2_127, %c0_128] {strides = array<i32: 1, 2, 2, 1>} : memref<3x10x10x32xf32, #tpu.memory_space<vmem>>, vector<1x4x4x32xf32>
        %286 = vector.shape_cast %285 : vector<1x4x4x32xf32> to vector<4x4x32xf32>
        %287 = vector.extract_strided_slice %0 {offsets = [20, 0], sizes = [1, 32], strides = [1, 1]} : vector<27x32xf32> to vector<1x32xf32>
        %288 = vector.shape_cast %287 : vector<1x32xf32> to vector<32xf32>
        %289 = vector.shape_cast %288 : vector<32xf32> to vector<1x1x32xf32>
        %290 = vector.broadcast %289 : vector<1x1x32xf32> to vector<4x4x32xf32>
        %291 = arith.mulf %286, %290 : vector<4x4x32xf32>
        %292 = arith.addf %283, %291 : vector<4x4x32xf32>
        %293 = arith.index_cast %265 : i32 to index
        %c1_129 = arith.constant 1 : index
        %c0_130 = arith.constant 0 : index
        %c0_131 = arith.constant 0 : index
        %294 = tpu.strided_load %arg6[%293, %c1_129, %c0_130, %c0_131] {strides = array<i32: 1, 2, 2, 1>} : memref<3x10x10x32xf32, #tpu.memory_space<vmem>>, vector<1x4x4x32xf32>
        %295 = vector.shape_cast %294 : vector<1x4x4x32xf32> to vector<4x4x32xf32>
        %296 = vector.extract_strided_slice %0 {offsets = [21, 0], sizes = [1, 32], strides = [1, 1]} : vector<27x32xf32> to vector<1x32xf32>
        %297 = vector.shape_cast %296 : vector<1x32xf32> to vector<32xf32>
        %298 = vector.shape_cast %297 : vector<32xf32> to vector<1x1x32xf32>
        %299 = vector.broadcast %298 : vector<1x1x32xf32> to vector<4x4x32xf32>
        %300 = arith.mulf %295, %299 : vector<4x4x32xf32>
        %301 = arith.addf %292, %300 : vector<4x4x32xf32>
        %302 = arith.index_cast %265 : i32 to index
        %c1_132 = arith.constant 1 : index
        %c1_133 = arith.constant 1 : index
        %c0_134 = arith.constant 0 : index
        %303 = tpu.strided_load %arg6[%302, %c1_132, %c1_133, %c0_134] {strides = array<i32: 1, 2, 2, 1>} : memref<3x10x10x32xf32, #tpu.memory_space<vmem>>, vector<1x4x4x32xf32>
        %304 = vector.shape_cast %303 : vector<1x4x4x32xf32> to vector<4x4x32xf32>
        %305 = vector.extract_strided_slice %0 {offsets = [22, 0], sizes = [1, 32], strides = [1, 1]} : vector<27x32xf32> to vector<1x32xf32>
        %306 = vector.shape_cast %305 : vector<1x32xf32> to vector<32xf32>
        %307 = vector.shape_cast %306 : vector<32xf32> to vector<1x1x32xf32>
        %308 = vector.broadcast %307 : vector<1x1x32xf32> to vector<4x4x32xf32>
        %309 = arith.mulf %304, %308 : vector<4x4x32xf32>
        %310 = arith.addf %301, %309 : vector<4x4x32xf32>
        %311 = arith.index_cast %265 : i32 to index
        %c1_135 = arith.constant 1 : index
        %c2_136 = arith.constant 2 : index
        %c0_137 = arith.constant 0 : index
        %312 = tpu.strided_load %arg6[%311, %c1_135, %c2_136, %c0_137] {strides = array<i32: 1, 2, 2, 1>} : memref<3x10x10x32xf32, #tpu.memory_space<vmem>>, vector<1x4x4x32xf32>
        %313 = vector.shape_cast %312 : vector<1x4x4x32xf32> to vector<4x4x32xf32>
        %314 = vector.extract_strided_slice %0 {offsets = [23, 0], sizes = [1, 32], strides = [1, 1]} : vector<27x32xf32> to vector<1x32xf32>
        %315 = vector.shape_cast %314 : vector<1x32xf32> to vector<32xf32>
        %316 = vector.shape_cast %315 : vector<32xf32> to vector<1x1x32xf32>
        %317 = vector.broadcast %316 : vector<1x1x32xf32> to vector<4x4x32xf32>
        %318 = arith.mulf %313, %317 : vector<4x4x32xf32>
        %319 = arith.addf %310, %318 : vector<4x4x32xf32>
        %320 = arith.index_cast %265 : i32 to index
        %c2_138 = arith.constant 2 : index
        %c0_139 = arith.constant 0 : index
        %c0_140 = arith.constant 0 : index
        %321 = tpu.strided_load %arg6[%320, %c2_138, %c0_139, %c0_140] {strides = array<i32: 1, 2, 2, 1>} : memref<3x10x10x32xf32, #tpu.memory_space<vmem>>, vector<1x4x4x32xf32>
        %322 = vector.shape_cast %321 : vector<1x4x4x32xf32> to vector<4x4x32xf32>
        %323 = vector.extract_strided_slice %0 {offsets = [24, 0], sizes = [1, 32], strides = [1, 1]} : vector<27x32xf32> to vector<1x32xf32>
        %324 = vector.shape_cast %323 : vector<1x32xf32> to vector<32xf32>
        %325 = vector.shape_cast %324 : vector<32xf32> to vector<1x1x32xf32>
        %326 = vector.broadcast %325 : vector<1x1x32xf32> to vector<4x4x32xf32>
        %327 = arith.mulf %322, %326 : vector<4x4x32xf32>
        %328 = arith.addf %319, %327 : vector<4x4x32xf32>
        %329 = arith.index_cast %265 : i32 to index
        %c2_141 = arith.constant 2 : index
        %c1_142 = arith.constant 1 : index
        %c0_143 = arith.constant 0 : index
        %330 = tpu.strided_load %arg6[%329, %c2_141, %c1_142, %c0_143] {strides = array<i32: 1, 2, 2, 1>} : memref<3x10x10x32xf32, #tpu.memory_space<vmem>>, vector<1x4x4x32xf32>
        %331 = vector.shape_cast %330 : vector<1x4x4x32xf32> to vector<4x4x32xf32>
        %332 = vector.extract_strided_slice %0 {offsets = [25, 0], sizes = [1, 32], strides = [1, 1]} : vector<27x32xf32> to vector<1x32xf32>
        %333 = vector.shape_cast %332 : vector<1x32xf32> to vector<32xf32>
        %334 = vector.shape_cast %333 : vector<32xf32> to vector<1x1x32xf32>
        %335 = vector.broadcast %334 : vector<1x1x32xf32> to vector<4x4x32xf32>
        %336 = arith.mulf %331, %335 : vector<4x4x32xf32>
        %337 = arith.addf %328, %336 : vector<4x4x32xf32>
        %338 = arith.index_cast %265 : i32 to index
        %c2_144 = arith.constant 2 : index
        %c2_145 = arith.constant 2 : index
        %c0_146 = arith.constant 0 : index
        %339 = tpu.strided_load %arg6[%338, %c2_144, %c2_145, %c0_146] {strides = array<i32: 1, 2, 2, 1>} : memref<3x10x10x32xf32, #tpu.memory_space<vmem>>, vector<1x4x4x32xf32>
        %340 = vector.shape_cast %339 : vector<1x4x4x32xf32> to vector<4x4x32xf32>
        %341 = vector.extract_strided_slice %0 {offsets = [26, 0], sizes = [1, 32], strides = [1, 1]} : vector<27x32xf32> to vector<1x32xf32>
        %342 = vector.shape_cast %341 : vector<1x32xf32> to vector<32xf32>
        %343 = vector.shape_cast %342 : vector<32xf32> to vector<1x1x32xf32>
        %344 = vector.broadcast %343 : vector<1x1x32xf32> to vector<4x4x32xf32>
        %345 = arith.mulf %340, %344 : vector<4x4x32xf32>
        %346 = arith.addf %337, %345 : vector<4x4x32xf32>
        %347 = vector.shape_cast %346 : vector<4x4x32xf32> to vector<16x32xf32>
        %cst_147 = arith.constant dense<0.000000e+00> : vector<16xf32>
        %348 = vector.multi_reduction <add>, %347, %cst_147 [1] : vector<16x32xf32> to vector<16xf32>
        %349 = vector.shape_cast %348 : vector<16xf32> to vector<16x1xf32>
        %cst_148 = arith.constant 3.200000e+01 : f32
        %350 = vector.broadcast %cst_148 : f32 to vector<16x1xf32>
        %351 = arith.divf %349, %350 : vector<16x1xf32>
        %352 = vector.broadcast %351 : vector<16x1xf32> to vector<16x32xf32>
        %353 = arith.subf %347, %352 : vector<16x32xf32>
        %354 = arith.mulf %353, %353 : vector<16x32xf32>
        %cst_149 = arith.constant dense<0.000000e+00> : vector<16xf32>
        %355 = vector.multi_reduction <add>, %354, %cst_149 [1] : vector<16x32xf32> to vector<16xf32>
        %356 = vector.shape_cast %355 : vector<16xf32> to vector<16x1xf32>
        %cst_150 = arith.constant 3.200000e+01 : f32
        %357 = vector.broadcast %cst_150 : f32 to vector<16x1xf32>
        %358 = arith.divf %356, %357 : vector<16x1xf32>
        %cst_151 = arith.constant 9.99999974E-6 : f32
        %359 = vector.broadcast %cst_151 : f32 to vector<16x1xf32>
        %360 = arith.addf %358, %359 : vector<16x1xf32>
        %361 = math.rsqrt %360 : vector<16x1xf32>
        %362 = vector.broadcast %361 : vector<16x1xf32> to vector<16x32xf32>
        %363 = arith.mulf %353, %362 : vector<16x32xf32>
        %364 = vector.broadcast %1 : vector<1x32xf32> to vector<16x32xf32>
        %365 = arith.mulf %363, %364 : vector<16x32xf32>
        %366 = vector.broadcast %2 : vector<1x32xf32> to vector<16x32xf32>
        %367 = arith.addf %365, %366 : vector<16x32xf32>
        %c0_i32_152 = arith.constant 0 : i32
        %368 = arith.addi %69, %c0_i32_152 : i32
        %369 = arith.index_cast %8 : i32 to index
        %370 = arith.index_cast %368 : i32 to index
        %c0_153 = arith.constant 0 : index
        %371 = vector.load %arg5[%369, %370, %c0_153] : memref<2x69x32xf32, #tpu.memory_space<vmem>>, vector<1x16x32xf32>
        %372 = vector.shape_cast %371 : vector<1x16x32xf32> to vector<16x32xf32>
        %373 = vector.shape_cast %367 : vector<16x32xf32> to vector<1x16x32xf32>
        tpu.vector_store %arg5[%369, %370, %c0_153], %373 {strides = array<i32>} : memref<2x69x32xf32, #tpu.memory_space<vmem>>, vector<1x16x32xf32>,
      }
      %c4_i32_32 = arith.constant 4 : i32
    }
    %c2_i32_10 = arith.constant 2 : i32
    return
  }
  func.func @transform_0(%arg0: i32) -> (i32, i32, i32) {
    %c0_i32 = arith.constant 0 : i32
    %c0_i32_0 = arith.constant 0 : i32
    %c0_i32_1 = arith.constant 0 : i32
    return %arg0, %c0_i32, %c0_i32_0 : i32, i32, i32
  }
  func.func @transform_1(%arg0: i32) -> (i32, i32) {
    %c0_i32 = arith.constant 0 : i32
    %c0_i32_0 = arith.constant 0 : i32
    %c0_i32_1 = arith.constant 0 : i32
    return %c0_i32, %c0_i32_0 : i32, i32
  }
  func.func @transform_2(%arg0: i32) -> (i32, i32) {
    %c0_i32 = arith.constant 0 : i32
    %c0_i32_0 = arith.constant 0 : i32
    %c0_i32_1 = arith.constant 0 : i32
    return %c0_i32, %c0_i32_0 : i32, i32
  }
  func.func @transform_3(%arg0: i32) -> (i32, i32) {
    %c0_i32 = arith.constant 0 : i32
    %c0_i32_0 = arith.constant 0 : i32
    %c0_i32_1 = arith.constant 0 : i32
    return %c0_i32, %c0_i32_0 : i32, i32
  }
  func.func @transform_4(%arg0: i32) -> (i32, i32, i32) {
    %c0_i32 = arith.constant 0 : i32
    %c0_i32_0 = arith.constant 0 : i32
    %c0_i32_1 = arith.constant 0 : i32
    return %arg0, %c0_i32, %c0_i32_0 : i32, i32, i32
  }
}

</mosaic_0001>

<bundles_post_ra>
// kernel: tpu_custom_call.1
= control target key start
LH: loop header
LB: loop body
LE: loop exit
PB: predicated region body
PF: predicated region fallthrough
CT: control target
= control target key end

     0   :  { %s1526_s15 = smov 0   ;;  %s2183_s0 = inlined_call_operand.vmem [shape: f32[4,261,32], index: 0, kind: input, shape index: {}]   ;;  %s2184_s1 = inlined_call_operand.vmem [shape: f32[27,32], index: 1, kind: input, shape index: {}]   ;;  %s2185_s2 = inlined_call_operand.vmem [shape: f32[1,32], index: 2, kind: input, shape index: {}]   ;;  %s2186_s3 = inlined_call_operand.vmem [shape: f32[1,32], index: 3, kind: input, shape index: {}]   ;;  %s2187_s4 = inlined_call_operand.vmem [shape: f32[4,69,32], index: 4, kind: output, shape index: {}]  }
   0x1 LB: > { %s1269_s16 = sadd.s32 4294967295, %s1485_s15   ;;  %p1273_p0 = scmp.ge.s32.totalorder %s1485_s15, 1  ;;  %s1485_s15 = sphi %s1526_s15, %s14_s15  }
   0x2   : > { %p164_p1 = scmp.lt.s32.totalorder %s1485_s15, 3 }
   0x4   : > { %p165_p2 = pnand %p1273_p0, %p164_p1 }
   0x5   : > { %s1274_s17 = sshll.u32 (!%p165_p2), %s1269_s16, 1  ;;  %s1694_s12 = smov (!%p165_p2), 0  }
   0x6   : > { %168 = sbr.rel (%p165_p2) target bundleno = 816 (0x330), region = 36  ;;  %p193_p3 = scmp.lt.s32.totalorder (!%p165_p2), %s1274_s17, 3 }
   0xb   : > { %v1537_v0 = vld [vmem:[%s2184_s1] sm:$0xff]  ;;  %v1542_v1 = vld [vmem:[%s2184_s1 + $0x8] sm:$0xff]  ;;  %v1547_v2 = vld [vmem:[%s2184_s1 + $0x10] sm:$0xff]  ;;  %vm212_vm0 = vcmask 261120   ;;  %v1495_v5 = vmov 0.0   ;;  %s2194_s17 = smov (!%p193_p3, %s1274_s17), 3 }
   0xc   : > { %2189 = vst [vmem:[#allocation3_spill] sm:$0xff] %v1537_v0  ;;  %v1552_v3 = vld [vmem:[%s2184_s1 + $0x18] sm:$0x7]  ;;  %v1557_v4 = vld [vmem:[%s2185_s2] sm:$0x1]  ;;  %s1421_s30 = smul.u32 264, %s2194_s17 }
   0xd   : > { %213 = vst.msk [vmem:[#allocation2] sm:$0xff] %vm212_vm0, %v1495_v5  ;;  %v1564_v6 = vld [vmem:[%s2186_s3] sm:$0x1]  ;;  %s1422_s5 = smul.u32 72, %s2194_s17  ;;  %vm214_vm1 = vcmask 254976  }
   0xe   : > { %216 = vst.msk [vmem:[#allocation2 + $0x10] sm:$0xff] %vm212_vm0, %v1495_v5  ;;  %s1579_s8 = scalar_lea.vmem %s2183_s0, %s1421_s30 }
   0xf   : > { %218 = vst.msk [vmem:[#allocation2 + $0x20] sm:$0xff] %vm212_vm0, %v1495_v5  ;;  %s1586_s11 = scalar_lea.vmem %s2187_s4, %s1422_s5 }
  0x10   : > { %220 = vst.msk [vmem:[#allocation2 + $0x30] sm:$0xff] %vm212_vm0, %v1495_v5 }
  0x11   : > { %222 = vst.msk [vmem:[#allocation2 + $0x40] sm:$0xff] %vm212_vm0, %v1495_v5 }
  0x12   : > { %224 = vst.msk [vmem:[#allocation2 + $0x50] sm:$0xff] %vm212_vm0, %v1495_v5 }
  0x13   : > { %226 = vst.msk [vmem:[#allocation2 + $0x60] sm:$0xff] %vm212_vm0, %v1495_v5 }
  0x14   : > { %228 = vst.msk [vmem:[#allocation2 + $0x70] sm:$0xff] %vm212_vm0, %v1495_v5 }
  0x15   : > { %230 = vst.msk [vmem:[#allocation2 + $0x80] sm:$0xff] %vm212_vm0, %v1495_v5 }
  0x16   : > { %232 = vst.msk [vmem:[#allocation2 + $0x90] sm:$0xff] %vm212_vm0, %v1495_v5 }
  0x17   : > { %234 = vst.msk [vmem:[#allocation2 + $0xa0] sm:$0xff] %vm212_vm0, %v1495_v5 }
  0x18   : > { %236 = vst.msk [vmem:[#allocation2 + $0xb0] sm:$0xff] %vm212_vm0, %v1495_v5 }
  0x19   : > { %238 = vst.msk [vmem:[#allocation2 + $0xc0] sm:$0xff] %vm212_vm0, %v1495_v5 }
  0x1a   : > { %240 = vst.msk [vmem:[#allocation2 + $0xd0] sm:$0xff] %vm212_vm0, %v1495_v5 }
  0x1b   : > { %242 = vst.msk [vmem:[#allocation2 + $0xe0] sm:$0xff] %vm212_vm0, %v1495_v5 }
  0x1c   : > { %244 = vst.msk [vmem:[#allocation2 + $0xf0] sm:$0xff] %vm212_vm0, %v1495_v5 }
  0x1d   : > { %246 = vst.msk [vmem:[#allocation2 + $0x100] sm:$0xff] %vm212_vm0, %v1495_v5 }
  0x1e   : > { %248 = vst.msk [vmem:[#allocation2 + $0x110] sm:$0xff] %vm212_vm0, %v1495_v5 }
  0x1f   : > { %250 = vst.msk [vmem:[#allocation2 + $0x120] sm:$0xff] %vm212_vm0, %v1495_v5 }
  0x20   : > { %252 = vst.msk [vmem:[#allocation2 + $0x130] sm:$0xff] %vm212_vm0, %v1495_v5 }
  0x21   : > { %254 = vst.msk [vmem:[#allocation2 + $0x140] sm:$0xff] %vm212_vm0, %v1495_v5 }
  0x22   : > { %256 = vst.msk [vmem:[#allocation2 + $0x150] sm:$0xff] %vm212_vm0, %v1495_v5 }
  0x23   : > { %258 = vst.msk [vmem:[#allocation2 + $0x160] sm:$0xff] %vm212_vm0, %v1495_v5 }
  0x24   : > { %260 = vst.msk [vmem:[#allocation2 + $0x170] sm:$0xff] %vm212_vm0, %v1495_v5 }
  0x25   : > { %262 = vst.msk [vmem:[#allocation2 + $0x180] sm:$0xff] %vm212_vm0, %v1495_v5 }
  0x26   : > { %264 = vst.msk [vmem:[#allocation2 + $0x190] sm:$0xff] %vm212_vm0, %v1495_v5 }
  0x27   : > { %266 = vst.msk [vmem:[#allocation2 + $0x1a0] sm:$0xff] %vm212_vm0, %v1495_v5 }
  0x28   : > { %268 = vst.msk [vmem:[#allocation2 + $0x1b0] sm:$0xff] %vm212_vm0, %v1495_v5 }
  0x29   : > { %270 = vst.msk [vmem:[#allocation2 + $0x1c0] sm:$0xff] %vm212_vm0, %v1495_v5 }
  0x2a   : > { %272 = vst.msk [vmem:[#allocation2 + $0x1d0] sm:$0xff] %vm212_vm0, %v1495_v5 }
  0x2b   : > { %215 = vst.msk [vmem:[#allocation2 + $0x8] sm:$0x3] %vm214_vm1, %v1495_v5 }
  0x2c   : > { %217 = vst.msk [vmem:[#allocation2 + $0x18] sm:$0x3] %vm214_vm1, %v1495_v5 }
  0x2d   : > { %219 = vst.msk [vmem:[#allocation2 + $0x28] sm:$0x3] %vm214_vm1, %v1495_v5 }
  0x2e   : > { %221 = vst.msk [vmem:[#allocation2 + $0x38] sm:$0x3] %vm214_vm1, %v1495_v5 }
  0x2f   : > { %223 = vst.msk [vmem:[#allocation2 + $0x48] sm:$0x3] %vm214_vm1, %v1495_v5 }
  0x30   : > { %225 = vst.msk [vmem:[#allocation2 + $0x58] sm:$0x3] %vm214_vm1, %v1495_v5 }
  0x31   : > { %227 = vst.msk [vmem:[#allocation2 + $0x68] sm:$0x3] %vm214_vm1, %v1495_v5 }
  0x32   : > { %229 = vst.msk [vmem:[#allocation2 + $0x78] sm:$0x3] %vm214_vm1, %v1495_v5 }
  0x33   : > { %231 = vst.msk [vmem:[#allocation2 + $0x88] sm:$0x3] %vm214_vm1, %v1495_v5 }
  0x34   : > { %233 = vst.msk [vmem:[#allocation2 + $0x98] sm:$0x3] %vm214_vm1, %v1495_v5 }
  0x35   : > { %235 = vst.msk [vmem:[#allocation2 + $0xa8] sm:$0x3] %vm214_vm1, %v1495_v5 }
  0x36   : > { %237 = vst.msk [vmem:[#allocation2 + $0xb8] sm:$0x3] %vm214_vm1, %v1495_v5 }
  0x37   : > { %239 = vst.msk [vmem:[#allocation2 + $0xc8] sm:$0x3] %vm214_vm1, %v1495_v5 }
  0x38   : > { %241 = vst.msk [vmem:[#allocation2 + $0xd8] sm:$0x3] %vm214_vm1, %v1495_v5 }
  0x39   : > { %243 = vst.msk [vmem:[#allocation2 + $0xe8] sm:$0x3] %vm214_vm1, %v1495_v5 }
  0x3a   : > { %245 = vst.msk [vmem:[#allocation2 + $0xf8] sm:$0x3] %vm214_vm1, %v1495_v5 }
  0x3b   : > { %247 = vst.msk [vmem:[#allocation2 + $0x108] sm:$0x3] %vm214_vm1, %v1495_v5 }
  0x3c   : > { %249 = vst.msk [vmem:[#allocation2 + $0x118] sm:$0x3] %vm214_vm1, %v1495_v5 }
  0x3d   : > { %251 = vst.msk [vmem:[#allocation2 + $0x128] sm:$0x3] %vm214_vm1, %v1495_v5 }
  0x3e   : > { %253 = vst.msk [vmem:[#allocation2 + $0x138] sm:$0x3] %vm214_vm1, %v1495_v5 }
  0x3f   : > { %255 = vst.msk [vmem:[#allocation2 + $0x148] sm:$0x3] %vm214_vm1, %v1495_v5 }
  0x40   : > { %257 = vst.msk [vmem:[#allocation2 + $0x158] sm:$0x3] %vm214_vm1, %v1495_v5 }
  0x41   : > { %259 = vst.msk [vmem:[#allocation2 + $0x168] sm:$0x3] %vm214_vm1, %v1495_v5 }
  0x42   : > { %261 = vst.msk [vmem:[#allocation2 + $0x178] sm:$0x3] %vm214_vm1, %v1495_v5 }
  0x43   : > { %263 = vst.msk [vmem:[#allocation2 + $0x188] sm:$0x3] %vm214_vm1, %v1495_v5 }
  0x44   : > { %265 = vst.msk [vmem:[#allocation2 + $0x198] sm:$0x3] %vm214_vm1, %v1495_v5 }
  0x45   : > { %267 = vst.msk [vmem:[#allocation2 + $0x1a8] sm:$0x3] %vm214_vm1, %v1495_v5 }
  0x46   : > { %269 = vst.msk [vmem:[#allocation2 + $0x1b8] sm:$0x3] %vm214_vm1, %v1495_v5 }
  0x47   : > { %271 = vst.msk [vmem:[#allocation2 + $0x1c8] sm:$0x3] %vm214_vm1, %v1495_v5 }
  0x48   : > { %273 = vst.msk [vmem:[#allocation2 + $0x1d8] sm:$0x3] %vm214_vm1, %v1495_v5 }
  0x49 LB: >> { %s280_s13 = smul.u32 264, %s1489_s12  ;;  %vm283_vm2 = vcmask 258048   ;;  %v1496_v17 = vmov 32.0   ;;  %v1497_v29 = vmov 0.0   ;;  %v1738_v39 = vperm.slane %v1557_v4, 0  ;;  %s1750_s18 = smov 0   ;;  %s1489_s12 = sphi %s1694_s12, %s279_s12  }
  0x4a   : >> { %1454 = vrcp.f32 %v1496_v17  ;;  %324 = vst.msk [vmem:[#allocation2] sm:$0xff] %vm212_vm0, %v1497_v29  ;;  %s321_s16 = smul.u32 72, %s1489_s12  ;;  %v1742_v41 = vperm.slane %v1564_v6, 0 }
  0x4b   : >> { %s281_s14 = scalar_lea.vmem %s1579_s8, %s280_s13  ;;  %325 = vst.msk [vmem:[#allocation2 + $0x8] sm:$0x3] %vm214_vm1, %v1497_v29 }
  0x4c   : >> { %v282_v7 = vld [vmem:[%s281_s14] sm:$0x1f]  ;;  %v344_v8 = vld [vmem:[%s281_s14 + $0x5] sm:$0xff]  ;;  %v345_v9 = vld [vmem:[%s281_s14 + $0xd] sm:$0xff]  ;;  %326 = vst.msk [vmem:[#allocation2 + $0x10] sm:$0xff] %vm212_vm0, %v1497_v29  ;;  %s322_s17 = scalar_lea.vmem %s1586_s11, %s321_s16 }
  0x4d   : >> { %v284_v10 = vsel %vm283_vm2, %v282_v7, 0.0  ;;  %v346_v11 = vld [vmem:[%s281_s14 + $0x15] sm:$0xff]  ;;  %v347_v12 = vld [vmem:[%s281_s14 + $0x1d] sm:$0xff]  ;;  %353 = vst.msk [vmem:[#allocation2 + $0xb1] sm:$0xff] %vm212_vm0, %v344_v8  ;;  %v348_v13 = vld [vmem:[%s281_s14 + $0x25] sm:$0xff] }
  0x4e   : >> { %354 = vst.msk [vmem:[#allocation2 + $0xc1] sm:$0xff] %vm212_vm0, %v345_v9  ;;  %285 = vadd.xlane.f32.xlu0 %v284_v10  ;;  %v349_v14 = vld [vmem:[%s281_s14 + $0x2d] sm:$0xff]  ;;  %v350_v15 = vld [vmem:[%s281_s14 + $0x35] sm:$0xff]  ;;  %v351_v16 = vld [vmem:[%s281_s14 + $0x3d] sm:$0xff] }
  0x4f   : >> { %355 = vst.msk [vmem:[#allocation2 + $0xd1] sm:$0xff] %vm212_vm0, %v346_v11 }
  0x50   : >> { %356 = vst.msk [vmem:[#allocation2 + $0xe1] sm:$0xff] %vm212_vm0, %v347_v12  ;;  %v1455_v18 = vpop.eup %1454 }
  0x51   : >> { %357 = vst.msk [vmem:[#allocation2 + $0xf1] sm:$0xff] %vm212_vm0, %v348_v13  ;;  %v288_v19 = vmul.f32 32.0, %v1455_v18  ;;  %vm292_vm3 = vweird.f32 %v1455_v18 }
  0x52   : >> { %358 = vst.msk [vmem:[#allocation2 + $0x101] sm:$0xff] %vm212_vm0, %v349_v14 }
  0x53   : >> { %359 = vst.msk [vmem:[#allocation2 + $0x111] sm:$0xff] %vm212_vm0, %v350_v15  ;;  %v289_v20 = vsub.f32 1.0, %v288_v19 }
  0x54   : >> { %360 = vst.msk [vmem:[#allocation2 + $0x121] sm:$0xff] %vm212_vm0, %v351_v16 }
  0x55   : >> { %v290_v21 = vmul.f32 %v1455_v18, %v289_v20  ;;  %327 = vst.msk [vmem:[#allocation2 + $0x18] sm:$0x3] %vm214_vm1, %v1497_v29 }
  0x56   : >> { %328 = vst.msk [vmem:[#allocation2 + $0x20] sm:$0xff] %vm212_vm0, %v1497_v29 }
  0x57   : >> { %v291_v22 = vadd.f32 %v1455_v18, %v290_v21  ;;  %329 = vst.msk [vmem:[#allocation2 + $0x28] sm:$0x3] %vm214_vm1, %v1497_v29 }
  0x58   : >> { %330 = vst.msk [vmem:[#allocation2 + $0x30] sm:$0xff] %vm212_vm0, %v1497_v29 }
  0x59   : >> { %v1712_v23 = vsel %vm292_vm3, %v1455_v18, %v291_v22  ;;  %331 = vst.msk [vmem:[#allocation2 + $0x38] sm:$0x3] %vm214_vm1, %v1497_v29 }
  0x5a   : >> { %332 = vst.msk [vmem:[#allocation2 + $0x40] sm:$0xff] %vm212_vm0, %v1497_v29 }
  0x5b   : >> { %333 = vst.msk [vmem:[#allocation2 + $0x48] sm:$0x3] %vm214_vm1, %v1497_v29 }
  0x5c   : >> { %334 = vst.msk [vmem:[#allocation2 + $0x50] sm:$0xff] %vm212_vm0, %v1497_v29 }
  0x5d   : >> { %335 = vst.msk [vmem:[#allocation2 + $0x58] sm:$0x3] %vm214_vm1, %v1497_v29 }
  0x5e   : >> { %336 = vst.msk [vmem:[#allocation2 + $0x60] sm:$0xff] %vm212_vm0, %v1497_v29 }
  0x5f   : >> { %337 = vst.msk [vmem:[#allocation2 + $0x68] sm:$0x3] %vm214_vm1, %v1497_v29 }
  0x60   : >> { %338 = vst.msk [vmem:[#allocation2 + $0x70] sm:$0xff] %vm212_vm0, %v1497_v29 }
  0x61   : >> { %339 = vst.msk [vmem:[#allocation2 + $0x78] sm:$0x3] %vm214_vm1, %v1497_v29 }
  0x62   : >> { %340 = vst.msk [vmem:[#allocation2 + $0x80] sm:$0xff] %vm212_vm0, %v1497_v29 }
  0x63   : >> { %341 = vst.msk [vmem:[#allocation2 + $0x88] sm:$0x3] %vm214_vm1, %v1497_v29 }
  0x64   : >> { %342 = vst.msk [vmem:[#allocation2 + $0x90] sm:$0xff] %vm212_vm0, %v1497_v29 }
  0x65   : >> { %343 = vst.msk [vmem:[#allocation2 + $0x98] sm:$0x3] %vm214_vm1, %v1497_v29 }
  0xc1   : >> { %v286_v24 = vpop.xlane.xlu0 %285 }
  0xc2   : >> { %v294_v25 = vmul.f32 %v1712_v23, %v286_v24 }
  0xc4   : >> { %v295_v26 = vsub.f32 %v282_v7, %v294_v25 }
  0xc6   : >> { %v296_v27 = vmul.f32 %v295_v26, %v295_v26 }
  0xc8   : >> { %v297_v28 = vsel %vm283_vm2, %v296_v27, 0.0 }
  0xc9   : >> { %298 = vadd.xlane.f32.xlu0 %v297_v28 }
 0x13c   : >> { %v299_v30 = vpop.xlane.xlu0 %298 }
 0x13d   : >> { %v300_v31 = vmul.f32 %v299_v30, %v1712_v23 }
 0x13f   : >> { %v301_v32 = vadd.f32 1e-05, %v300_v31 }
 0x141   : >> { %1456 = vrsqrt.f32 %v301_v32  ;;  %vm308_vm5 = vweird.f32 %v301_v32 }
 0x147   : >> { %v1457_v33 = vpop.eup %1456 }
 0x148   : >> { %v303_v34 = vmul.f32 %v1457_v33, %v301_v32  ;;  %vm309_vm4 = vweird.f32 %v1457_v33 }
 0x149   : >> { %vm310_vm6 = vmor %vm308_vm5, %vm309_vm4 }
 0x14a   : >> { %v304_v35 = vmul.f32 %v1457_v33, %v303_v34 }
 0x14c   : >> { %v305_v36 = vmul.f32 0.5, %v304_v35 }
 0x14e   : >> { %v306_v37 = vsub.f32 1.5, %v305_v36 }
 0x150   : >> { %v307_v38 = vmul.f32 %v1457_v33, %v306_v37 }
 0x152   : >> { %v311_v40 = vsel %vm310_vm6, %v1457_v33, %v307_v38 }
 0x153   : >> { %v312_v42 = vmul.f32 %v311_v40, %v295_v26 }
 0x155   : >> { %v316_v43 = vmul.f32 %v1738_v39, %v312_v42 }
 0x157   : >> { %v320_v44 = vadd.f32 %v1742_v41, %v316_v43 }
 0x159   : >> { %323 = vst.msk [vmem:[%s322_s17] sm:$0x1f] %vm283_vm2, %v320_v44 }
 0x15a LB: >>> { %v2190_v0 = vld [vmem:[#allocation3_spill] sm:$0xff]  ;;  %s367_s19 = sadd.s32 2, %s1493_s18  ;;  %s1493_s18 = sphi %s1750_s18, %s2192_s18  }
 0x15b   : >>> { %s369_s20 = ssub.s32 0, %s367_s19  ;;  %p381_p4 = scmp.lt.s32.totalorder %s367_s19, 1 }
 0x15c   : >>> { %s1278_s21 = smin.u32 %s369_s20, %s367_s19  ;;  %p382_p5 = scmp.ge.s32.totalorder %s367_s19, 5 }
 0x15d   : >>> { %1458 = sdivrem.u32 %s1278_s21, 3  ;;  %p368_p7 = scmp.lt.s32.totalorder %s367_s19, 0 }
 0x15e   : >>> { %p1756_p6 = por %p382_p5, %p381_p4 }
 0x15f   : >>> { %v1498_v45 = vmov (%p1756_p6), 0.0  }
 0x166   : >>> { %s1459_s23 = spop.drf %1458 }
 0x167   : >>> { %s1460_s24 = spop.drf %1458 }
 0x168   : >>> { %s373_s25 = ssub.s32 0, %s1460_s24  ;;  %386 = sbr.rel (!%p1756_p6) target bundleno = 388 (0x184), region = 54 }
 0x169   : >>> { %s2196_s25 = smov (!%p368_p7, %s373_s25), %s1460_s24 }
 0x16a   : >>> { %p1280_p8 = scmp.lt.s32.totalorder %s2196_s25, 0  ;;  %s379_s26 = sadd.s32 3, %s2196_s25 }
 0x16c   : >>> { %s2198_s26 = smov (!%p1280_p8, %s379_s26), %s2196_s25 }
 0x16d   : >>> { %s387_s27 = smul.u32 160, %s2198_s26 }
 0x16f   : >>> { %s388_s28 = scalar_lea.vmem [#allocation2], %s387_s27 }
 0x170   : >>> { %389 = vst.msk [vmem:[%s388_s28] sm:$0xff] %vm212_vm0, %v1498_v45 }
 0x171   : >>> { %390 = vst.msk [vmem:[%s388_s28 + $0x8] sm:$0x3] %vm214_vm1, %v1498_v45 }
 0x172   : >>> { %391 = vst.msk [vmem:[%s388_s28 + $0x10] sm:$0xff] %vm212_vm0, %v1498_v45 }
 0x173   : >>> { %392 = vst.msk [vmem:[%s388_s28 + $0x18] sm:$0x3] %vm214_vm1, %v1498_v45 }
 0x174   : >>> { %393 = vst.msk [vmem:[%s388_s28 + $0x20] sm:$0xff] %vm212_vm0, %v1498_v45 }
 0x175   : >>> { %394 = vst.msk [vmem:[%s388_s28 + $0x28] sm:$0x3] %vm214_vm1, %v1498_v45 }
 0x176   : >>> { %395 = vst.msk [vmem:[%s388_s28 + $0x30] sm:$0xff] %vm212_vm0, %v1498_v45 }
 0x177   : >>> { %396 = vst.msk [vmem:[%s388_s28 + $0x38] sm:$0x3] %vm214_vm1, %v1498_v45 }
 0x178   : >>> { %397 = vst.msk [vmem:[%s388_s28 + $0x40] sm:$0xff] %vm212_vm0, %v1498_v45 }
 0x179   : >>> { %398 = vst.msk [vmem:[%s388_s28 + $0x48] sm:$0x3] %vm214_vm1, %v1498_v45 }
 0x17a   : >>> { %399 = vst.msk [vmem:[%s388_s28 + $0x50] sm:$0xff] %vm212_vm0, %v1498_v45 }
 0x17b   : >>> { %400 = vst.msk [vmem:[%s388_s28 + $0x58] sm:$0x3] %vm214_vm1, %v1498_v45 }
 0x17c   : >>> { %401 = vst.msk [vmem:[%s388_s28 + $0x60] sm:$0xff] %vm212_vm0, %v1498_v45 }
 0x17d   : >>> { %402 = vst.msk [vmem:[%s388_s28 + $0x68] sm:$0x3] %vm214_vm1, %v1498_v45 }
 0x17e   : >>> { %403 = vst.msk [vmem:[%s388_s28 + $0x70] sm:$0xff] %vm212_vm0, %v1498_v45 }
 0x17f   : >>> { %404 = vst.msk [vmem:[%s388_s28 + $0x78] sm:$0x3] %vm214_vm1, %v1498_v45 }
 0x180   : >>> { %405 = vst.msk [vmem:[%s388_s28 + $0x80] sm:$0xff] %vm212_vm0, %v1498_v45 }
 0x181   : >>> { %406 = vst.msk [vmem:[%s388_s28 + $0x88] sm:$0x3] %vm214_vm1, %v1498_v45 }
 0x182   : >>> { %407 = vst.msk [vmem:[%s388_s28 + $0x90] sm:$0xff] %vm212_vm0, %v1498_v45 }
 0x183   : >>> { %408 = vst.msk [vmem:[%s388_s28 + $0x98] sm:$0x3] %vm214_vm1, %v1498_v45 }
 0x184 PF: >>> { %411 = sbr.rel (%p1756_p6) target bundleno = 407 (0x197), region = 58  ;;  %s412_s29 = sadd.s32 (!%p1756_p6), 1, %s1493_s18 }
 0x185   : >>> { %p413_p9 = scmp.gt.s32.totalorder (!%p1756_p6), %s412_s29, 0  ;;  %p1281_p10 = scmp.lt.s32.totalorder (!%p1756_p6), %s412_s29, 3 }
 0x186   : >>> { %s1137_s30 = smul.u32 (!%p1756_p6), 160, %s2198_s26 }
 0x188   : >>> { %s1138_s9 = scalar_lea.vmem (!%p1756_p6), [#allocation2], %s1137_s30 }
 0x189   : >>> { %s2200_s29 = smov (!%p413_p9, %s412_s29), 0 }
 0x18a   : >>> { %s2202_s29 = smov (!%p1281_p10, %s2200_s29), 3 }
 0x18b   : >>> { %s1286_s5 = sshll.u32 %s2202_s29, 6 }
 0x18c   : >>> { %s1134_s6 = sadd.s32 %s1286_s5, %s280_s13 }
 0x18d   : >>> { %s1135_s7 = scalar_lea.vmem %s1579_s8, %s1134_s6 }
 0x18e   : >>> { %v1287_v46 = vld [vmem:[%s1135_s7 + $0x5] sm:$0xff]  ;;  %v1288_v47 = vld [vmem:[%s1135_s7 + $0xd] sm:$0xff]  ;;  %v1289_v48 = vld [vmem:[%s1135_s7 + $0x15] sm:$0xff] }
 0x18f   : >>> { %1295 = vst.msk [vmem:[%s1138_s9 + $0x11] sm:$0xff] %vm212_vm0, %v1287_v46  ;;  %v1290_v49 = vld [vmem:[%s1135_s7 + $0x1d] sm:$0xff]  ;;  %v1291_v50 = vld [vmem:[%s1135_s7 + $0x25] sm:$0xff]  ;;  %v1292_v51 = vld [vmem:[%s1135_s7 + $0x2d] sm:$0xff] }
 0x190   : >>> { %1296 = vst.msk [vmem:[%s1138_s9 + $0x21] sm:$0xff] %vm212_vm0, %v1288_v47  ;;  %v1293_v52 = vld [vmem:[%s1135_s7 + $0x35] sm:$0xff]  ;;  %v1294_v53 = vld [vmem:[%s1135_s7 + $0x3d] sm:$0xff] }
 0x191   : >>> { %1297 = vst.msk [vmem:[%s1138_s9 + $0x31] sm:$0xff] %vm212_vm0, %v1289_v48 }
 0x192   : >>> { %1298 = vst.msk [vmem:[%s1138_s9 + $0x41] sm:$0xff] %vm212_vm0, %v1290_v49 }
 0x193   : >>> { %1299 = vst.msk [vmem:[%s1138_s9 + $0x51] sm:$0xff] %vm212_vm0, %v1291_v50 }
 0x194   : >>> { %1300 = vst.msk [vmem:[%s1138_s9 + $0x61] sm:$0xff] %vm212_vm0, %v1292_v51 }
 0x195   : >>> { %1301 = vst.msk [vmem:[%s1138_s9 + $0x71] sm:$0xff] %vm212_vm0, %v1293_v52 }
 0x196   : >>> { %1302 = vst.msk [vmem:[%s1138_s9 + $0x81] sm:$0xff] %vm212_vm0, %v1294_v53 }
 0x197 PF: >>> { %s443_s10 = ssub.s32 0, %s1493_s18  ;;  %s1803_s17 = sadd.s32 1, %s1493_s18   ;;  %v1811_v54 = vperm.slane %v2190_v0, 0  ;;  %v1814_v55 = vperm.slane %v2190_v0, 1  ;;  %v1817_v56 = vperm.slane %v2190_v0, 2  ;;  %v1820_v57 = vperm.slane %v2190_v0, 3 }
 0x198   : >>> { %s1303_s14 = smin.u32 %s1493_s18, %s443_s10  ;;  %s613_s19 = ssub.s32 0, %s1803_s17  ;;  %v1823_v58 = vperm.slane %v2190_v0, 4  ;;  %v1826_v59 = vperm.slane %v2190_v0, 5  ;;  %v1829_v60 = vperm.slane %v2190_v0, 6  ;;  %v1832_v61 = vperm.slane %v2190_v0, 7 }
 0x199   : >>> { %1461 = sdivrem.u32 %s1303_s14, 3  ;;  %s1341_s20 = smin.u32 %s613_s19, %s1803_s17  ;;  %v1836_v62 = vperm.slane %v1542_v1, 0  ;;  %v1840_v63 = vperm.slane %v1542_v1, 1  ;;  %v1843_v5 = vperm.slane %v1542_v1, 2  ;;  %v1846_v7 = vperm.slane %v1542_v1, 3 }
 0x19a   : >>> { %1464 = sdivrem.u32 %s1341_s20, 3  ;;  %p442_p11 = scmp.lt.s32.totalorder %s1493_s18, 0  ;;  %v1878_v40 = vperm.slane %v1542_v1, 4  ;;  %v1885_v48 = vperm.slane %v1542_v1, 5  ;;  %v1888_v49 = vperm.slane %v1542_v1, 6  ;;  %v1891_v50 = vperm.slane %v1542_v1, 7 }
 0x19b   : >>> { %p612_p13 = scmp.lt.s32.totalorder %s1803_s17, 0  ;;  %s781_s7 = smul.u32 160, %s2198_s26 }
 0x19c   : >>> { %s1414_s26 = sshll.u32 %s1493_s18, 4  ;;  %p363_p1 = scmp.ge.s32.totalorder %s1803_s17, 4  }
 0x19d   : >>> { %s1941_s10 = scalar_lea.vmem [#allocation2], %s781_s7  ;;  %s1232_s14 = sadd.s32 %s1414_s26, %s321_s16 }
 0x19e   : >>> { %v1395_v0 = vld [vmem:[%s1941_s10 + $0x31] ss:$2 sm:$0xf]  ;;  %s1233_s19 = scalar_lea.vmem %s1586_s11, %s1232_s14  ;;  %s2192_s18 = smov %s1803_s17 }
 0x19f   : >> { %s279_s12 = sadd.s32 (%p363_p1), 1, %s1489_s12  }
 0x1a0   : >> { %p276_p2 = scmp.ge.s32.totalorder (%p363_p1), %s279_s12, 2  }
 0x1a2   : >>> { %s1462_s21 = spop.drf %1461 }
 0x1a3   : >>> { %s1463_s22 = spop.drf %1461 }
 0x1a4   : >>> { %s447_s23 = ssub.s32 0, %s1463_s22  ;;  %s1465_s24 = spop.drf %1464 }
 0x1a5   : >>> { %s2204_s23 = smov (!%p442_p11, %s447_s23), %s1463_s22  ;;  %s1808_s27 = spop.drf %1464 }
 0x1a6   : >>> { %p1305_p12 = scmp.lt.s32.totalorder %s2204_s23, 0  ;;  %s453_s25 = sadd.s32 3, %s2204_s23 }
 0x1a7   : >>> { %s617_s29 = ssub.s32 0, %s1808_s27 }
 0x1a8   : >>> { %s2206_s25 = smov (!%p1305_p12, %s453_s25), %s2204_s23  ;;  %s2208_s29 = smov (!%p612_p13, %s617_s29), %s1808_s27 }
 0x1a9   : >>> { %s455_s28 = smul.u32 160, %s2206_s25  ;;  %p1343_p0 = scmp.lt.s32.totalorder %s2208_s29, 0 }
 0x1aa   : >>> { %s623_s5 = sadd.s32 3, %s2208_s29 }
 0x1ab   : >>> { %s1848_s30 = scalar_lea.vmem [#allocation2], %s455_s28  ;;  %s2210_s5 = smov (!%p1343_p0, %s623_s5), %s2208_s29 }
 0x1ac   : >>> { %v457_v8 = vld [vmem:[%s1848_s30] ss:$2 sm:$0xf]  ;;  %v1309_v12 = vld [vmem:[%s1848_s30 + $0x1] ss:$2 sm:$0xf] }
 0x1ad   : >>> { %v1306_v9 = vld [vmem:[%s1848_s30 + $0x20] ss:$2 sm:$0xf]  ;;  %v465_v10 = vmul.f32 %v1811_v54, %v457_v8  ;;  %v1310_v13 = vld [vmem:[%s1848_s30 + $0x21] ss:$2 sm:$0xf]  ;;  %v482_v14 = vmul.f32 %v1309_v12, %v1814_v55 }
 0x1ae   : >>> { %v466_v11 = vmul.f32 %v1306_v9, %v1811_v54  ;;  %v483_v15 = vmul.f32 %v1310_v13, %v1814_v55  ;;  %v1313_v16 = vld [vmem:[%s1848_s30 + $0x2] ss:$2 sm:$0xf]  ;;  %v1317_v18 = vld [vmem:[%s1848_s30 + $0x10] ss:$2 sm:$0xf] }
 0x1af   : >>> { %v1314_v17 = vld [vmem:[%s1848_s30 + $0x22] ss:$2 sm:$0xf]  ;;  %v1318_v19 = vld [vmem:[%s1848_s30 + $0x30] ss:$2 sm:$0xf]  ;;  %v486_v20 = vadd.f32 %v482_v14, %v465_v10  ;;  %v499_v22 = vmul.f32 %v1313_v16, %v1817_v56  ;;  %v517_v29 = vmul.f32 %v1317_v18, %v1820_v57 }
 0x1b0   : >>> { %v487_v21 = vadd.f32 %v483_v15, %v466_v11  ;;  %v500_v24 = vmul.f32 %v1314_v17, %v1817_v56  ;;  %v1321_v25 = vld [vmem:[%s1848_s30 + $0x11] ss:$2 sm:$0xf]  ;;  %v518_v30 = vmul.f32 %v1318_v19, %v1820_v57  ;;  %v1325_v31 = vld [vmem:[%s1848_s30 + $0x12] ss:$2 sm:$0xf] }
 0x1b1   : >>> { %v1322_v26 = vld [vmem:[%s1848_s30 + $0x31] ss:$2 sm:$0xf]  ;;  %v503_v27 = vadd.f32 %v499_v22, %v486_v20  ;;  %v1326_v32 = vld [vmem:[%s1848_s30 + $0x32] ss:$2 sm:$0xf]  ;;  %v534_v35 = vmul.f32 %v1321_v25, %v1823_v58  ;;  %v551_v44 = vmul.f32 %v1325_v31, %v1826_v59 }
 0x1b2   : >>> { %v504_v28 = vadd.f32 %v500_v24, %v487_v21  ;;  %v535_v36 = vmul.f32 %v1322_v26, %v1823_v58  ;;  %v1329_v37 = vld [vmem:[%s1848_s30 + $0x20] ss:$2 sm:$0xf]  ;;  %v552_v45 = vmul.f32 %v1326_v32, %v1826_v59  ;;  %v1333_v46 = vld [vmem:[%s1848_s30 + $0x21] ss:$2 sm:$0xf] }
 0x1b3   : >>> { %v521_v33 = vadd.f32 %v517_v29, %v503_v27  ;;  %v1330_v38 = vld [vmem:[%s1848_s30 + $0x40] ss:$2 sm:$0xf]  ;;  %v1334_v47 = vld [vmem:[%s1848_s30 + $0x41] ss:$2 sm:$0xf]  ;;  %v569_v53 = vmul.f32 %v1329_v37, %v1829_v60  ;;  %v586_v10 = vmul.f32 %v1333_v46, %v1832_v61 }
 0x1b4   : >>> { %v522_v34 = vadd.f32 %v518_v30, %v504_v28  ;;  %v570_v8 = vmul.f32 %v1330_v38, %v1829_v60  ;;  %v1337_v9 = vld [vmem:[%s1848_s30 + $0x22] ss:$2 sm:$0xf]  ;;  %s625_s6 = smul.u32 160, %s2210_s5  ;;  %v1899_v12 = vperm.slane %v1547_v2, 0  ;;  %v1902_v13 = vperm.slane %v1547_v2, 1 }
 0x1b5   : >>> { %v538_v42 = vadd.f32 %v534_v35, %v521_v33  ;;  %v1338_v11 = vld [vmem:[%s1848_s30 + $0x42] ss:$2 sm:$0xf]  ;;  %v587_v16 = vmul.f32 %v1334_v47, %v1832_v61  ;;  %v1907_v17 = vperm.slane %v1547_v2, 2  ;;  %v1910_v18 = vperm.slane %v1547_v2, 3 }
 0x1b6   : >>> { %v539_v43 = vadd.f32 %v535_v36, %v522_v34  ;;  %v1913_v19 = vperm.slane %v1547_v2, 4  ;;  %v1916_v20 = vperm.slane %v1547_v2, 5  ;;  %v1919_v21 = vperm.slane %v1547_v2, 6  ;;  %s1923_s9 = scalar_lea.vmem [#allocation2], %s625_s6 }
 0x1b7   : >>> { %v555_v51 = vadd.f32 %v551_v44, %v538_v42  ;;  %v603_v25 = vmul.f32 %v1337_v9, %v1836_v62  ;;  %v604_v26 = vmul.f32 %v1338_v11, %v1836_v62  ;;  %v627_v27 = vld [vmem:[%s1923_s9] ss:$2 sm:$0xf]  ;;  %v1347_v29 = vld [vmem:[%s1923_s9 + $0x1] ss:$2 sm:$0xf] }
 0x1b8   : >>> { %v556_v52 = vadd.f32 %v552_v45, %v539_v43  ;;  %v1344_v28 = vld [vmem:[%s1923_s9 + $0x20] ss:$2 sm:$0xf]  ;;  %v1348_v30 = vld [vmem:[%s1923_s9 + $0x21] ss:$2 sm:$0xf]  ;;  %v635_v33 = vmul.f32 %v1840_v63, %v627_v27  ;;  %v652_v42 = vmul.f32 %v1347_v29, %v1843_v5 }
 0x1b9   : >>> { %v573_v14 = vadd.f32 %v569_v53, %v555_v51  ;;  %v636_v34 = vmul.f32 %v1344_v28, %v1840_v63  ;;  %v1351_v35 = vld [vmem:[%s1923_s9 + $0x2] ss:$2 sm:$0xf]  ;;  %v653_v43 = vmul.f32 %v1348_v30, %v1843_v5  ;;  %v1355_v44 = vld [vmem:[%s1923_s9 + $0x10] ss:$2 sm:$0xf] }
 0x1ba   : >>> { %v574_v15 = vadd.f32 %v570_v8, %v556_v52  ;;  %v1352_v36 = vld [vmem:[%s1923_s9 + $0x22] ss:$2 sm:$0xf]  ;;  %v1356_v45 = vld [vmem:[%s1923_s9 + $0x30] ss:$2 sm:$0xf]  ;;  %v669_v51 = vmul.f32 %v1351_v35, %v1846_v7 }
 0x1bb   : >>> { %v590_v22 = vadd.f32 %v586_v10, %v573_v14  ;;  %v670_v52 = vmul.f32 %v1352_v36, %v1846_v7  ;;  %v783_v53 = vld [vmem:[%s1941_s10] ss:$2 sm:$0xf]  ;;  %v1359_v9 = vld [vmem:[%s1923_s9 + $0x11] ss:$2 sm:$0xf] }
 0x1bc   : >>> { %v591_v24 = vadd.f32 %v587_v16, %v574_v15  ;;  %v1379_v8 = vld [vmem:[%s1941_s10 + $0x20] ss:$2 sm:$0xf]  ;;  %v1360_v10 = vld [vmem:[%s1923_s9 + $0x31] ss:$2 sm:$0xf]  ;;  %v687_v15 = vmul.f32 %v1355_v44, %v1878_v40  ;;  %v688_v16 = vmul.f32 %v1356_v45, %v1878_v40  ;;  %v704_v29 = vmul.f32 %v1359_v9, %v1885_v48 }
 0x1bd   : >>> { %v607_v31 = vadd.f32 %v603_v25, %v590_v22  ;;  %v1382_v22 = vld [vmem:[%s1941_s10 + $0x1] ss:$2 sm:$0xf]  ;;  %v1363_v25 = vld [vmem:[%s1923_s9 + $0x12] ss:$2 sm:$0xf]  ;;  %v705_v30 = vmul.f32 %v1360_v10, %v1885_v48  ;;  %v791_v35 = vmul.f32 %v1907_v17, %v783_v53  ;;  %v792_v36 = vmul.f32 %v1379_v8, %v1907_v17 }
 0x1be   : >>> { %v608_v32 = vadd.f32 %v604_v26, %v591_v24  ;;  %v1383_v24 = vld [vmem:[%s1941_s10 + $0x21] ss:$2 sm:$0xf]  ;;  %v1364_v26 = vld [vmem:[%s1923_s9 + $0x32] ss:$2 sm:$0xf] }
 0x1bf   : >>> { %v639_v37 = vadd.f32 %v635_v33, %v607_v31  ;;  %v1386_v31 = vld [vmem:[%s1941_s10 + $0x2] ss:$2 sm:$0xf]  ;;  %v1371_v44 = vld [vmem:[%s1923_s9 + $0x21] ss:$2 sm:$0xf] }
 0x1c0   : >>> { %v640_v38 = vadd.f32 %v636_v34, %v608_v32  ;;  %v1387_v32 = vld [vmem:[%s1941_s10 + $0x22] ss:$2 sm:$0xf]  ;;  %v1372_v45 = vld [vmem:[%s1923_s9 + $0x41] ss:$2 sm:$0xf]  ;;  %v1974_v53 = vmul.f32 %v1386_v31, %v1913_v19 }
 0x1c1   : >>> { %v656_v46 = vadd.f32 %v652_v42, %v639_v37  ;;  %v1367_v33 = vld [vmem:[%s1923_s9 + $0x20] ss:$2 sm:$0xf]  ;;  %v721_v42 = vmul.f32 %v1363_v25, %v1888_v49  ;;  %v1977_v8 = vmul.f32 %v1387_v32, %v1913_v19  ;;  %v757_v25 = vmul.f32 %v1372_v45, %v1899_v12  ;;  %v1391_v32 = vld [vmem:[%s1941_s10 + $0x30] ss:$2 sm:$0xf] }
 0x1c2   : >>> { %v657_v47 = vadd.f32 %v653_v43, %v640_v38  ;;  %v1368_v34 = vld [vmem:[%s1923_s9 + $0x40] ss:$2 sm:$0xf]  ;;  %v722_v43 = vmul.f32 %v1364_v26, %v1888_v49 }
 0x1c3   : >>> { %v673_v11 = vadd.f32 %v669_v51, %v656_v46  ;;  %v1375_v46 = vld [vmem:[%s1923_s9 + $0x22] ss:$2 sm:$0xf]  ;;  %v1968_v51 = vmul.f32 %v1382_v22, %v1910_v18 }
 0x1c4   : >>> { %v674_v14 = vadd.f32 %v670_v52, %v657_v47  ;;  %v1376_v47 = vld [vmem:[%s1923_s9 + $0x42] ss:$2 sm:$0xf]  ;;  %v1971_v52 = vmul.f32 %v1383_v24, %v1910_v18  ;;  %v756_v24 = vmul.f32 %v1371_v44, %v1899_v12 }
 0x1c5   : >>> { %v691_v27 = vadd.f32 %v687_v15, %v673_v11  ;;  %v739_v11 = vmul.f32 %v1367_v33, %v1891_v50  ;;  %v1390_v15 = vld [vmem:[%s1941_s10 + $0x10] ss:$2 sm:$0xf]  ;;  %v1308_v22 = vld [vmem:[%s1848_s30 + $0x60] ss:$2 sm:$0xf] }
 0x1c6   : >>> { %v692_v28 = vadd.f32 %v688_v16, %v674_v14  ;;  %v740_v14 = vmul.f32 %v1368_v34, %v1891_v50  ;;  %v1307_v16 = vld [vmem:[%s1848_s30 + $0x40] ss:$2 sm:$0xf]  ;;  %v1394_v33 = vld [vmem:[%s1941_s10 + $0x11] ss:$2 sm:$0xf] }
 0x1c7   : >>> { %v708_v37 = vadd.f32 %v704_v29, %v691_v27  ;;  %v467_v26 = vmul.f32 %v1307_v16, %v1811_v54  ;;  %v468_v27 = vmul.f32 %v1308_v22, %v1811_v54  ;;  %v1312_v29 = vld [vmem:[%s1848_s30 + $0x61] ss:$2 sm:$0xf]  ;;  %v774_v54 = vmul.f32 %v1376_v47, %v1902_v13 }
 0x1c8   : >>> { %v709_v38 = vadd.f32 %v705_v30, %v692_v28  ;;  %v1311_v28 = vld [vmem:[%s1848_s30 + $0x41] ss:$2 sm:$0xf] }
 0x1c9   : >>> { %v725_v9 = vadd.f32 %v721_v42, %v708_v37  ;;  %v484_v34 = vmul.f32 %v1311_v28, %v1814_v55  ;;  %v485_v37 = vmul.f32 %v1312_v29, %v1814_v55  ;;  %v1316_v42 = vld [vmem:[%s1848_s30 + $0x62] ss:$2 sm:$0xf]  ;;  %v1323_v55 = vld [vmem:[%s1848_s30 + $0x51] ss:$2 sm:$0xf]  ;;  %v843_v29 = vmul.f32 %v1390_v15, %v1916_v20 }
 0x1ca   : >>> { %v726_v10 = vadd.f32 %v722_v43, %v709_v38  ;;  %v1315_v38 = vld [vmem:[%s1848_s30 + $0x42] ss:$2 sm:$0xf]  ;;  %v773_v43 = vmul.f32 %v1375_v46, %v1902_v13  ;;  %v502_v45 = vmul.f32 %v1316_v42, %v1817_v56  ;;  %v1324_v28 = vld [vmem:[%s1848_s30 + $0x71] ss:$2 sm:$0xf]  ;;  %v844_v15 = vmul.f32 %v1391_v32, %v1916_v20 }
 0x1cb   : >>> { %v743_v30 = vadd.f32 %v739_v11, %v725_v9  ;;  %v501_v44 = vmul.f32 %v1315_v38, %v1817_v56  ;;  %v1319_v9 = vld [vmem:[%s1848_s30 + $0x50] ss:$2 sm:$0xf]  ;;  %v488_v16 = vadd.f32 %v484_v34, %v467_v26  ;;  %v489_v22 = vadd.f32 %v485_v37, %v468_v27 }
 0x1cc   : >>> { %v744_v31 = vadd.f32 %v740_v14, %v726_v10  ;;  %v1320_v10 = vld [vmem:[%s1848_s30 + $0x70] ss:$2 sm:$0xf]  ;;  %v2007_v46 = vperm.slane %v1547_v2, 7  ;;  %v519_v47 = vmul.f32 %v1319_v9, %v1820_v57  ;;  %v536_v34 = vmul.f32 %v1323_v55, %v1823_v58 }
 0x1cd   : >>> { %v760_v11 = vadd.f32 %v756_v24, %v743_v30  ;;  %v520_v56 = vmul.f32 %v1320_v10, %v1820_v57  ;;  %v506_v26 = vadd.f32 %v502_v45, %v489_v22  ;;  %v1327_v27 = vld [vmem:[%s1848_s30 + $0x52] ss:$2 sm:$0xf]  ;;  %v537_v37 = vmul.f32 %v1324_v28, %v1823_v58  ;;  %v1331_v45 = vld [vmem:[%s1848_s30 + $0x60] ss:$2 sm:$0xf] }
 0x1ce   : >>> { %v761_v14 = vadd.f32 %v757_v25, %v744_v31  ;;  %v505_v25 = vadd.f32 %v501_v44, %v488_v16  ;;  %v1328_v30 = vld [vmem:[%s1848_s30 + $0x72] ss:$2 sm:$0xf]  ;;  %v860_v31 = vmul.f32 %v1394_v33, %v1919_v21  ;;  %v1332_v9 = vld [vmem:[%s1848_s30 + $0x80] ss:$2 sm:$0xf]  ;;  %v861_v10 = vmul.f32 %v1395_v0, %v1919_v21 }
 0x1cf   : >>> { %v777_v38 = vadd.f32 %v773_v43, %v760_v11  ;;  %v1398_v43 = vld [vmem:[%s1941_s10 + $0x12] ss:$2 sm:$0xf]  ;;  %v524_v44 = vadd.f32 %v520_v56, %v506_v26  ;;  %v2023_v33 = vperm.slane %v1552_v3, 0  ;;  %v553_v11 = vmul.f32 %v1327_v27, %v1826_v59 }
 0x1d0   : >>> { %v778_v24 = vadd.f32 %v774_v54, %v761_v14  ;;  %v523_v54 = vadd.f32 %v519_v47, %v505_v25  ;;  %v1399_v32 = vld [vmem:[%s1941_s10 + $0x32] ss:$2 sm:$0xf]  ;;  %v554_v58 = vmul.f32 %v1328_v30, %v1826_v59  ;;  %v1402_v14 = vld [vmem:[%s1941_s10 + $0x20] ss:$2 sm:$0xf]  ;;  %v571_v59 = vmul.f32 %v1331_v45, %v1829_v60 }
 0x1d1   : >>> { %v795_v42 = vadd.f32 %v791_v35, %v777_v38  ;;  %v541_v22 = vadd.f32 %v537_v37, %v524_v44  ;;  %v1335_v55 = vld [vmem:[%s1848_s30 + $0x61] ss:$2 sm:$0xf]  ;;  %v1403_v28 = vld [vmem:[%s1941_s10 + $0x40] ss:$2 sm:$0xf]  ;;  %v877_v30 = vmul.f32 %v1398_v43, %v2007_v46 }
 0x1d2   : >>> { %v796_v57 = vadd.f32 %v792_v36, %v778_v24  ;;  %v540_v16 = vadd.f32 %v536_v34, %v523_v54  ;;  %v1336_v0 = vld [vmem:[%s1848_s30 + $0x81] ss:$2 sm:$0xf]  ;;  %v2034_v47 = vperm.slane %v1552_v3, 1  ;;  %v2037_v56 = vperm.slane %v1552_v3, 2 }
 0x1d3   : >>> { %v812_v35 = vadd.f32 %v1968_v51, %v795_v42  ;;  %v572_v51 = vmul.f32 %v1332_v9, %v1829_v60  ;;  %v558_v25 = vadd.f32 %v554_v58, %v541_v22  ;;  %v1339_v26 = vld [vmem:[%s1848_s30 + $0x62] ss:$2 sm:$0xf]  ;;  %v878_v34 = vmul.f32 %v1399_v32, %v2007_v46  ;;  %v1406_v37 = vld [vmem:[%s1941_s10 + $0x21] ss:$2 sm:$0xf] }
 0x1d4   : >>> { %v813_v36 = vadd.f32 %v1971_v52, %v796_v57  ;;  %v557_v24 = vadd.f32 %v553_v11, %v540_v16  ;;  %v1340_v27 = vld [vmem:[%s1848_s30 + $0x82] ss:$2 sm:$0xf]  ;;  %v1407_v42 = vld [vmem:[%s1941_s10 + $0x41] ss:$2 sm:$0xf]  ;;  %v588_v60 = vmul.f32 %v1335_v55, %v1832_v61  ;;  %v895_v11 = vmul.f32 %v1402_v14, %v2023_v33 }
 0x1d5   : >>> { %v829_v52 = vadd.f32 %v1974_v53, %v812_v35  ;;  %v589_v53 = vmul.f32 %v1336_v0, %v1832_v61  ;;  %v576_v44 = vadd.f32 %v572_v51, %v558_v25  ;;  %v1345_v45 = vld [vmem:[%s1923_s9 + $0x40] ss:$2 sm:$0xf]  ;;  %v896_v43 = vmul.f32 %v1403_v28, %v2023_v33  ;;  %v1349_v22 = vld [vmem:[%s1923_s9 + $0x41] ss:$2 sm:$0xf] }
 0x1d6   : >>> { %v830_v38 = vadd.f32 %v1977_v8, %v813_v36  ;;  %v575_v54 = vadd.f32 %v571_v59, %v557_v24  ;;  %v1346_v9 = vld [vmem:[%s1923_s9 + $0x60] ss:$2 sm:$0xf]  ;;  %v605_v35 = vmul.f32 %v1339_v26, %v1836_v62  ;;  %v606_v36 = vmul.f32 %v1340_v27, %v1836_v62  ;;  %v1350_v55 = vld [vmem:[%s1923_s9 + $0x61] ss:$2 sm:$0xf] }
 0x1d7   : >>> { %v847_v57 = vadd.f32 %v843_v29, %v829_v52  ;;  %v1410_v58 = vld [vmem:[%s1941_s10 + $0x22] ss:$2 sm:$0xf]  ;;  %v593_v16 = vadd.f32 %v589_v53, %v576_v44  ;;  %v912_v0 = vmul.f32 %v1406_v37, %v2034_v47  ;;  %v913_v14 = vmul.f32 %v1407_v42, %v2034_v47 }
 0x1d8   : >>> { %v848_v8 = vadd.f32 %v844_v15, %v830_v38  ;;  %v1411_v32 = vld [vmem:[%s1941_s10 + $0x42] ss:$2 sm:$0xf]  ;;  %v592_v15 = vadd.f32 %v588_v60, %v575_v54  ;;  %v637_v28 = vmul.f32 %v1345_v45, %v1840_v63  ;;  %v638_v59 = vmul.f32 %v1346_v9, %v1840_v63 }
 0x1d9   : >>> { %v864_v61 = vadd.f32 %v860_v31, %v847_v57  ;;  %v610_v38 = vadd.f32 %v606_v36, %v593_v16  ;;  %v1353_v31 = vld [vmem:[%s1923_s9 + $0x42] ss:$2 sm:$0xf]  ;;  %v929_v24 = vmul.f32 %v1410_v58, %v2037_v56  ;;  %v930_v25 = vmul.f32 %v1411_v32, %v2037_v56 }
 0x1da   : >>> { %v865_v29 = vadd.f32 %v861_v10, %v848_v8  ;;  %v609_v62 = vadd.f32 %v605_v35, %v592_v15  ;;  %v1354_v10 = vld [vmem:[%s1923_s9 + $0x62] ss:$2 sm:$0xf]  ;;  %v654_v26 = vmul.f32 %v1349_v22, %v1843_v5  ;;  %v655_v27 = vmul.f32 %v1350_v55, %v1843_v5 }
 0x1db   : >>> { %v881_v51 = vadd.f32 %v877_v30, %v864_v61  ;;  %v642_v60 = vadd.f32 %v638_v59, %v610_v38  ;;  %v1357_v30 = vld [vmem:[%s1923_s9 + $0x50] ss:$2 sm:$0xf]  ;;  %v671_v53 = vmul.f32 %v1353_v31, %v1846_v7  ;;  %v672_v57 = vmul.f32 %v1354_v10, %v1846_v7  ;;  %v1369_v22 = vld [vmem:[%s1923_s9 + $0x60] ss:$2 sm:$0xf] }
 0x1dc   : >>> { %v882_v52 = vadd.f32 %v878_v34, %v865_v29  ;;  %v641_v63 = vadd.f32 %v637_v28, %v609_v62  ;;  %v1358_v34 = vld [vmem:[%s1923_s9 + $0x70] ss:$2 sm:$0xf]  ;;  %v689_v5 = vmul.f32 %v1357_v30, %v1878_v40  ;;  %v1370_v55 = vld [vmem:[%s1923_s9 + $0x80] ss:$2 sm:$0xf] }
 0x1dd   : >>> { %v899_v37 = vadd.f32 %v895_v11, %v881_v51  ;;  %v659_v45 = vadd.f32 %v655_v27, %v642_v60  ;;  %v690_v9 = vmul.f32 %v1358_v34, %v1878_v40  ;;  %v1361_v11 = vld [vmem:[%s1923_s9 + $0x51] ss:$2 sm:$0xf]  ;;  %v1365_v7 = vld [vmem:[%s1923_s9 + $0x52] ss:$2 sm:$0xf]  ;;  %v742_v31 = vmul.f32 %v1370_v55, %v1891_v50 }
 0x1de   : >>> { %v900_v42 = vadd.f32 %v896_v43, %v882_v52  ;;  %v658_v44 = vadd.f32 %v654_v26, %v641_v63  ;;  %v1362_v43 = vld [vmem:[%s1923_s9 + $0x71] ss:$2 sm:$0xf]  ;;  %v1366_v61 = vld [vmem:[%s1923_s9 + $0x72] ss:$2 sm:$0xf]  ;;  %v706_v40 = vmul.f32 %v1361_v11, %v1885_v48  ;;  %v723_v28 = vmul.f32 %v1365_v7, %v1888_v49 }
 0x1df   : >>> { %v916_v8 = vadd.f32 %v912_v0, %v899_v37  ;;  %v676_v36 = vadd.f32 %v672_v57, %v659_v45  ;;  %v707_v16 = vmul.f32 %v1362_v43, %v1885_v48  ;;  %v724_v59 = vmul.f32 %v1366_v61, %v1888_v49  ;;  %v1373_v51 = vld [vmem:[%s1923_s9 + $0x61] ss:$2 sm:$0xf]  ;;  %v1377_v10 = vld [vmem:[%s1923_s9 + $0x62] ss:$2 sm:$0xf] }
 0x1e0   : >>> { %v917_v54 = vadd.f32 %v913_v14, %v900_v42  ;;  %v675_v35 = vadd.f32 %v671_v53, %v658_v44  ;;  %v1374_v52 = vld [vmem:[%s1923_s9 + $0x81] ss:$2 sm:$0xf]  ;;  %v741_v48 = vmul.f32 %v1369_v22, %v1891_v50  ;;  %v1381_v26 = vld [vmem:[%s1941_s10 + $0x60] ss:$2 sm:$0xf]  ;;  %v758_v49 = vmul.f32 %v1373_v51, %v1899_v12 }
 0x1e1   : >>> { %v2079_v58 = vadd.f32 %v929_v24, %v916_v8  ;;  %v694_v15 = vadd.f32 %v690_v9, %v676_v36  ;;  %v1378_v24 = vld [vmem:[%s1923_s9 + $0x82] ss:$2 sm:$0xf]  ;;  %v759_v42 = vmul.f32 %v1374_v52, %v1899_v12  ;;  %v775_v63 = vmul.f32 %v1377_v10, %v1902_v13  ;;  %v1384_v30 = vld [vmem:[%s1941_s10 + $0x41] ss:$2 sm:$0xf] }
 0x1e2   : >>> { %v2081_v32 = vadd.f32 %v930_v25, %v917_v54  ;;  %v693_v29 = vadd.f32 %v689_v5, %v675_v35  ;;  %v1380_v25 = vld [vmem:[%s1941_s10 + $0x40] ss:$2 sm:$0xf]  ;;  %v776_v60 = vmul.f32 %v1378_v24, %v1902_v13  ;;  %v1385_v50 = vld [vmem:[%s1941_s10 + $0x61] ss:$2 sm:$0xf]  ;;  %v794_v54 = vmul.f32 %v1381_v26, %v1907_v17 }
 0x1e3   : >>> { %941 = vst [vmem:[#allocation1] ss:$2 sm:$0xff] %v2079_v58  ;;  %v711_v14 = vadd.f32 %v707_v16, %v694_v15  ;;  %v793_v8 = vmul.f32 %v1380_v25, %v1907_v17  ;;  %v1388_v44 = vld [vmem:[%s1941_s10 + $0x42] ss:$2 sm:$0xf]  ;;  %v810_v9 = vmul.f32 %v1384_v30, %v1910_v18  ;;  %v811_v11 = vmul.f32 %v1385_v50, %v1910_v18 }
 0x1e4   : >>> { %943 = vst [vmem:[#allocation1 + $0x1] ss:$2 sm:$0xff] %v2081_v32  ;;  %v710_v0 = vadd.f32 %v706_v40, %v693_v29  ;;  %v1389_v45 = vld [vmem:[%s1941_s10 + $0x62] ss:$2 sm:$0xf]  ;;  %v827_v17 = vmul.f32 %v1388_v44, %v1913_v19 }
 0x1e5   : >>> { %v728_v38 = vadd.f32 %v724_v59, %v711_v14  ;;  %v1392_v43 = vld [vmem:[%s1941_s10 + $0x50] ss:$2 sm:$0xf]  ;;  %v828_v61 = vmul.f32 %v1389_v45, %v1913_v19  ;;  %v1396_v29 = vld [vmem:[%s1941_s10 + $0x51] ss:$2 sm:$0xf] }
 0x1e6   : >>> { %v727_v62 = vadd.f32 %v723_v28, %v710_v0  ;;  %v1393_v35 = vld [vmem:[%s1941_s10 + $0x70] ss:$2 sm:$0xf]  ;;  %v1397_v15 = vld [vmem:[%s1941_s10 + $0x71] ss:$2 sm:$0xf]  ;;  %v845_v22 = vmul.f32 %v1392_v43, %v1916_v20  ;;  %v862_v59 = vmul.f32 %v1396_v29, %v1919_v21 }
 0x1e7   : >>> { %v746_v37 = vadd.f32 %v742_v31, %v728_v38  ;;  %v846_v18 = vmul.f32 %v1393_v35, %v1916_v20  ;;  %v1400_v55 = vld [vmem:[%s1941_s10 + $0x52] ss:$2 sm:$0xf]  ;;  %v863_v19 = vmul.f32 %v1397_v15, %v1919_v21  ;;  %v1404_v51 = vld [vmem:[%s1941_s10 + $0x60] ss:$2 sm:$0xf] }
 0x1e8   : >>> { %v745_v27 = vadd.f32 %v741_v48, %v727_v62  ;;  %v1401_v0 = vld [vmem:[%s1941_s10 + $0x72] ss:$2 sm:$0xf]  ;;  %v1405_v52 = vld [vmem:[%s1941_s10 + $0x80] ss:$2 sm:$0xf]  ;;  %v879_v48 = vmul.f32 %v1400_v55, %v2007_v46  ;;  %v897_v26 = vmul.f32 %v1404_v51, %v2023_v33 }
 0x1e9   : >>> { %v763_v57 = vadd.f32 %v759_v42, %v746_v37  ;;  %v880_v31 = vmul.f32 %v1401_v0, %v2007_v46  ;;  %v1408_v10 = vld [vmem:[%s1941_s10 + $0x61] ss:$2 sm:$0xf]  ;;  %v1412_v37 = vld [vmem:[%s1941_s10 + $0x62] ss:$2 sm:$0xf] }
 0x1ea   : >>> { %v762_v53 = vadd.f32 %v758_v49, %v745_v27  ;;  %v1409_v20 = vld [vmem:[%s1941_s10 + $0x81] ss:$2 sm:$0xf]  ;;  %v898_v27 = vmul.f32 %v1405_v52, %v2023_v33  ;;  %v1413_v49 = vld [vmem:[%s1941_s10 + $0x82] ss:$2 sm:$0xf]  ;;  %v931_v46 = vmul.f32 %v1412_v37, %v2037_v56 }
 0x1eb   : >>> { %v948_v34 = vld.sshfl [vmem:[#allocation1] sm:$0xff pattern:$0x75316420]  ;;  %v780_v13 = vadd.f32 %v776_v60, %v763_v57  ;;  %v915_v60 = vmul.f32 %v1409_v20, %v2034_v47 }
 0x1ec   : >>> { %v952_v12 = vsel %vm212_vm0, %v948_v34, 0.0  ;;  %v779_v5 = vadd.f32 %v775_v63, %v762_v53  ;;  %v914_v63 = vmul.f32 %v1408_v10, %v2034_v47  ;;  %v932_v34 = vmul.f32 %v1413_v49, %v2037_v56 }
 0x1ed   : >>> { %953 = vadd.xlane.f32.xlu0 %v952_v12  ;;  %v798_v7 = vadd.f32 %v794_v54, %v780_v13  ;;  %v1499_v12 = vmov 839922192  }
 0x1ee   : >>> { %v797_v36 = vadd.f32 %v793_v8, %v779_v5  ;;  %v963_v45 = vunpack.c.l.s4 %v1499_v12  ;;  %v1500_v5 = vmov 1985246804  }
 0x1ef   : >>> { %v815_v16 = vadd.f32 %v811_v11, %v798_v7  ;;  %v967_v47 = vunpack.c.l.s4 %v1500_v5 }
 0x1f0   : >>> { %v814_v40 = vadd.f32 %v810_v9, %v797_v36  ;;  %v2141_v13 = vunpack.c.0.s8 %v963_v45 }
 0x1f1   : >>> { %v832_v28 = vadd.f32 %v828_v61, %v815_v16  ;;  %v2143_v9 = vunpack.c.0.s8 %v967_v47 }
 0x1f2   : >>> { %v831_v14 = vadd.f32 %v827_v17, %v814_v40 }
 0x1f3   : >>> { %v850_v38 = vadd.f32 %v846_v18, %v832_v28 }
 0x1f4   : >>> { %v849_v62 = vadd.f32 %v845_v22, %v831_v14 }
 0x1f5   : >>> { %v867_v25 = vadd.f32 %v863_v19, %v850_v38 }
 0x1f6   : >>> { %v866_v24 = vadd.f32 %v862_v59, %v849_v62 }
 0x1f7   : >>> { %v884_v21 = vadd.f32 %v880_v31, %v867_v25 }
 0x1f8   : >>> { %v883_v42 = vadd.f32 %v879_v48, %v866_v24  ;;  %v1061_v24 = vrot.slane %v1738_v39, 4 }
 0x1f9   : >>> { %v902_v50 = vadd.f32 %v898_v27, %v884_v21  ;;  %v1067_v27 = vrot.slane %v1742_v41, 4 }
 0x1fa   : >>> { %v901_v30 = vadd.f32 %v897_v26, %v883_v42 }
 0x1fb   : >>> { %v919_v57 = vadd.f32 %v915_v60, %v902_v50 }
 0x1fc   : >>> { %v918_v53 = vadd.f32 %v914_v63, %v901_v30 }
 0x1fd   : >>> { %v936_v54 = vadd.f32 %v932_v34, %v919_v57 }
 0x1fe   : >>> { %v935_v8 = vadd.f32 %v931_v46, %v918_v53 }
 0x1ff   : >>> { %947 = vst [vmem:[#allocation1 + $0x11] ss:$2 sm:$0xff] %v936_v54 }
 0x200   : >>> { %945 = vst [vmem:[#allocation1 + $0x10] ss:$2 sm:$0xff] %v935_v8 }
 0x207   : >>> { %v949_v33 = vld.sshfl [vmem:[#allocation1 + $0x10] sm:$0xff pattern:$0x75316420] }
 0x208   : >>> { %v955_v44 = vsel %vm212_vm0, %v949_v33, 0.0 }
 0x209   : >>> { %956 = vadd.xlane.f32.xlu0 %v955_v44 }
 0x260   : >>> { %v954_v11 = vpop.xlane.xlu0 %953 }
 0x261   : >>> { %v958_v56 = vmul.f32 %v954_v11, %v1712_v23 }
 0x263   : >>> { %v965_v43 = vperm.slane %v958_v56, %v2141_v13  ;;  %v969_v35 = vperm.slane %v958_v56, %v2143_v9 }
 0x265   : >>> { %v982_v36 = vsub.f32 %v2079_v58, %v965_v43  ;;  %v983_v7 = vsub.f32 %v2081_v32, %v969_v35 }
 0x267   : >>> { %v986_v17 = vmul.f32 %v982_v36, %v982_v36  ;;  %v987_v61 = vmul.f32 %v983_v7, %v983_v7 }
 0x269   : >>> { %994 = vst [vmem:[#allocation1] ss:$2 sm:$0xff] %v986_v17 }
 0x26a   : >>> { %996 = vst [vmem:[#allocation1 + $0x1] ss:$2 sm:$0xff] %v987_v61 }
 0x271   : >>> { %v1001_v29 = vld.sshfl [vmem:[#allocation1] sm:$0xff pattern:$0x75316420] }
 0x272   : >>> { %v1005_v15 = vsel %vm212_vm0, %v1001_v29, 0.0 }
 0x273   : >>> { %1006 = vadd.xlane.f32.xlu1 %v1005_v15 }
 0x27c   : >>> { %v957_v40 = vpop.xlane.xlu0 %956 }
 0x27d   : >>> { %v959_v16 = vmul.f32 %v957_v40, %v1712_v23 }
 0x27f   : >>> { %v973_v22 = vperm.slane %v959_v16, %v2141_v13  ;;  %v977_v18 = vperm.slane %v959_v16, %v2143_v9 }
 0x281   : >>> { %v984_v55 = vsub.f32 %v935_v8, %v973_v22  ;;  %v985_v0 = vsub.f32 %v936_v54, %v977_v18 }
 0x283   : >>> { %v988_v58 = vmul.f32 %v984_v55, %v984_v55  ;;  %v989_v14 = vmul.f32 %v985_v0, %v985_v0 }
 0x285   : >>> { %998 = vst [vmem:[#allocation1 + $0x10] ss:$2 sm:$0xff] %v988_v58 }
 0x286   : >>> { %1000 = vst [vmem:[#allocation1 + $0x11] ss:$2 sm:$0xff] %v989_v14 }
 0x28d   : >>> { %v1002_v32 = vld.sshfl [vmem:[#allocation1 + $0x10] sm:$0xff pattern:$0x75316420] }
 0x28e   : >>> { %v1008_v28 = vsel %vm212_vm0, %v1002_v32, 0.0 }
 0x28f   : >>> { %1009 = vadd.xlane.f32.xlu1 %v1008_v28 }
 0x2e6   : >>> { %v1007_v59 = vpop.xlane.xlu1 %1006 }
 0x2e7   : >>> { %v1011_v19 = vmul.f32 %v1007_v59, %v1712_v23 }
 0x2e9   : >>> { %v1013_v51 = vadd.f32 1e-05, %v1011_v19 }
 0x2eb   : >>> { %1467 = vrsqrt.f32 %v1013_v51  ;;  %vm1021_vm8 = vweird.f32 %v1013_v51 }
 0x2f1   : >>> { %v1468_v52 = vpop.eup %1467 }
 0x2f2   : >>> { %v1016_v62 = vmul.f32 %v1468_v52, %v1013_v51  ;;  %vm1022_vm7 = vweird.f32 %v1468_v52 }
 0x2f3   : >>> { %vm1023_vm9 = vmor %vm1021_vm8, %vm1022_vm7 }
 0x2f4   : >>> { %v1017_v38 = vmul.f32 %v1468_v52, %v1016_v62 }
 0x2f6   : >>> { %v1018_v48 = vmul.f32 0.5, %v1017_v38 }
 0x2f8   : >>> { %v1019_v31 = vsub.f32 1.5, %v1018_v48 }
 0x2fa   : >>> { %v1020_v10 = vmul.f32 %v1468_v52, %v1019_v31 }
 0x2fc   : >>> { %v1024_v20 = vsel %vm1023_vm9, %v1468_v52, %v1020_v10 }
 0x2fd   : >>> { %v1040_v25 = vperm.slane %v1024_v20, %v2141_v13  ;;  %v1044_v26 = vperm.slane %v1024_v20, %v2143_v9 }
 0x2ff   : >>> { %v1057_v37 = vmul.f32 %v1040_v25, %v982_v36  ;;  %v1058_v49 = vmul.f32 %v1044_v26, %v983_v7 }
 0x301   : >>> { %v1063_v42 = vmul.f32 %v1057_v37, %v1738_v39  ;;  %v1064_v21 = vmul.f32 %v1061_v24, %v1058_v49 }
 0x302   : >>> { %v1010_v30 = vpop.xlane.xlu1 %1009 }
 0x303   : >>> { %v1069_v63 = vadd.f32 %v1063_v42, %v1742_v41  ;;  %v1070_v60 = vadd.f32 %v1067_v27, %v1064_v21  ;;  %v1012_v50 = vmul.f32 %v1010_v30, %v1712_v23 }
 0x305   : >>> { %1077 = vst [vmem:[#allocation1] ss:$2 sm:$0xff] %v1069_v63  ;;  %v1014_v46 = vadd.f32 1e-05, %v1012_v50 }
 0x306   : >>> { %1079 = vst [vmem:[#allocation1 + $0x1] ss:$2 sm:$0xff] %v1070_v60 }
 0x307   : >>> { %1469 = vrsqrt.f32 %v1014_v46  ;;  %vm1031_vm11 = vweird.f32 %v1014_v46 }
 0x30d   : >>> { %v1084_v34 = vld.sshfl [vmem:[#allocation1] sm:$0xff pattern:$0x75316420]  ;;  %v1470_v53 = vpop.eup %1469 }
 0x30e   : >>> { %1415 = vst.msk [vmem:[%s1233_s19 + $0x5] sm:$0xff] %vm212_vm0, %v1084_v34  ;;  %v1026_v57 = vmul.f32 %v1470_v53, %v1014_v46  ;;  %vm1032_vm10 = vweird.f32 %v1470_v53 }
 0x30f   : >>> { %vm1033_vm12 = vmor %vm1031_vm11, %vm1032_vm10 }
 0x310   : >>> { %v1027_v8 = vmul.f32 %v1470_v53, %v1026_v57 }
 0x312   : >>> { %v1028_v54 = vmul.f32 0.5, %v1027_v8 }
 0x314   : >>> { %v1029_v33 = vsub.f32 1.5, %v1028_v54 }
 0x316   : >>> { %v1030_v44 = vmul.f32 %v1470_v53, %v1029_v33 }
 0x318   : >>> { %v1034_v12 = vsel %vm1033_vm12, %v1470_v53, %v1030_v44 }
 0x319   : >>> { %v1048_v45 = vperm.slane %v1034_v12, %v2141_v13  ;;  %v1052_v5 = vperm.slane %v1034_v12, %v2143_v9 }
 0x31b   : >>> { %v1059_v47 = vmul.f32 %v1048_v45, %v984_v55  ;;  %v1060_v11 = vmul.f32 %v1052_v5, %v985_v0 }
 0x31d   : >>> { %v1065_v56 = vmul.f32 %v1059_v47, %v1738_v39  ;;  %v1066_v43 = vmul.f32 %v1061_v24, %v1060_v11 }
 0x31f   : >>> { %v1071_v35 = vadd.f32 %v1065_v56, %v1742_v41  ;;  %v1072_v36 = vadd.f32 %v1067_v27, %v1066_v43 }
 0x321   : >>> { %1081 = vst [vmem:[#allocation1 + $0x10] ss:$2 sm:$0xff] %v1071_v35 }
 0x322   : >>> { %1083 = vst [vmem:[#allocation1 + $0x11] ss:$2 sm:$0xff] %v1072_v36 }
 0x326   : >> { %365 = sbr.rel (!%p363_p1) target bundleno = 346 (0x15a), region = 212 }
 0x329   : >>> { %v1085_v7 = vld.sshfl [vmem:[#allocation1 + $0x10] sm:$0xff pattern:$0x75316420] }
 0x32a   : >>> { %1416 = vst.msk [vmem:[%s1233_s19 + $0xd] sm:$0xff] %vm212_vm0, %v1085_v7 }
 0x32b   : > { %278 = sbr.rel (!%p276_p2) target bundleno = 73 (0x49), region = 223 }
 0x330 PF: > { %s14_s15 = sadd.s32 1, %s1485_s15  }
 0x331   : > { %p11_p3 = scmp.ge.s32.totalorder %s14_s15, 4  }
 0x333   :  { %13 = sbr.rel (!%p11_p3) target bundleno = 1 (0x1), region = 234 }

</bundles_post_ra>
